<compile_context>
chip_gen: v6e
topology: v6e:2x2x1
jax: 0.10.0
libtpu: 0.0.40
codegen_flags: <defaults>
</compile_context>

<pallas_src>
import jax
import jax.numpy as jnp
from jax.experimental import pallas as pl
from jax.experimental.pallas import tpu as pltpu

IN_DIM = 28 * 28     # 784
HIDDEN = 128
OUT_DIM = 10
PAD_OUT = 128        # lane-dense padded output width
NEG_BIG = -1e30      # padded-logit bias -> exp underflows to exactly 0


def _round_up(n, m):
    return (n + m - 1) // m * m


def mlp_kernel(x_ref, w1_ref, b1_ref, w2_ref, b2_ref, o_ref):
    # x_ref : (bm, 784)      bf16 (or f32)
    # w1_ref: (784, 128)     bf16 (or f32)
    # b1_ref: (1, 128)       f32
    # w2_ref: (128, 128)     f32  (cols 10..127 are zero)
    # b2_ref: (1, 128)       f32  (cols 10..127 are -1e30)
    # o_ref : (bm, 128)      f32  (only cols 0..9 are meaningful)

    # Linear(784 -> 128) + ReLU, f32 accumulation on the MXU.
    h = jnp.dot(x_ref[...], w1_ref[...], preferred_element_type=jnp.float32)
    h = jnp.maximum(h + b1_ref[...], 0.0)

    # Linear(128 -> 10), padded to 128 output lanes.
    logits = jnp.dot(h, w2_ref[...], preferred_element_type=jnp.float32) + b2_ref[...]

    # Numerically stable softmax along dim=1. Padded lanes carry a -1e30 bias,
    # so exp(logit - max) is exactly 0 there and the denominator is unaffected.
    m = jnp.max(logits, axis=1, keepdims=True)
    e = jnp.exp(logits - m)
    s = jnp.sum(e, axis=1, keepdims=True)
    o_ref[...] = (e * pl.reciprocal(s, approx=True)).astype(o_ref.dtype)


def mlp_forward(x, w1, b1, w2, b2, *, bm=256, use_bf16=True):
    """Forward pass equivalent to the PyTorch MLP module.

    x : (B, 784) f32.  w1: (784, 128), b1: (1, 128), w2: (128, 10), b2: (1, 10).
    Returns (B, 10) f32 softmax probabilities.
    """
    B = x.shape[0]

    # Pick a batch tile: multiple of 8, capped at bm, and pad B up to it.
    bm = min(bm, max(8, _round_up(B, 8)))
    Bp = _round_up(B, bm)
    if Bp != B:
        x = jnp.pad(x, ((0, Bp - B), (0, 0)))

    # Stream the big operands as bf16; accumulate in f32 inside the kernel.
    compute_dtype = jnp.bfloat16 if use_bf16 else x.dtype
    xk = x.astype(compute_dtype)
    w1k = w1.astype(compute_dtype)
    b1k = b1.reshape(1, HIDDEN).astype(jnp.float32)

    # Pad the second linear layer to 128 output lanes (lane-dense output).
    w2p = jnp.pad(w2.astype(jnp.float32), ((0, 0), (0, PAD_OUT - OUT_DIM)))
    b2p = jnp.pad(b2.reshape(1, OUT_DIM).astype(jnp.float32),
                  ((0, 0), (0, PAD_OUT - OUT_DIM)),
                  constant_values=NEG_BIG)

    out = pl.pallas_call(
        mlp_kernel,
        out_shape=jax.ShapeDtypeStruct((Bp, PAD_OUT), jnp.float32),
        grid_spec=pltpu.PrefetchScalarGridSpec(
            num_scalar_prefetch=0,
            grid=(Bp // bm,),
            in_specs=[
                pl.BlockSpec((bm, IN_DIM), lambda i: (i, 0)),       # x tile
                pl.BlockSpec((IN_DIM, HIDDEN), lambda i: (0, 0)),   # W1 (resident)
                pl.BlockSpec((1, HIDDEN), lambda i: (0, 0)),        # b1 (resident)
                pl.BlockSpec((HIDDEN, PAD_OUT), lambda i: (0, 0)),  # W2 (resident)
                pl.BlockSpec((1, PAD_OUT), lambda i: (0, 0)),       # b2 (resident)
            ],
            out_specs=pl.BlockSpec((bm, PAD_OUT), lambda i: (i, 0)),
        ),
        compiler_params=pltpu.CompilerParams(
            dimension_semantics=("parallel",),
        ),
    )(xk, w1k, b1k, w2p, b2p)

    return out[:B, :OUT_DIM]


def init_params(key):
    # Shapes mirror the PyTorch module's Linears; weights kept transposed
    # ((in, out)) so the kernel does x @ W directly.
    k1, k2, k3, k4 = jax.random.split(key, 4)
    bound1 = 1.0 / jnp.sqrt(IN_DIM)
    bound2 = 1.0 / jnp.sqrt(HIDDEN)
    w1 = jax.random.uniform(k1, (IN_DIM, HIDDEN), jnp.float32, -bound1, bound1)
    b1 = jax.random.uniform(k2, (1, HIDDEN), jnp.float32, -bound1, bound1)
    w2 = jax.random.uniform(k3, (HIDDEN, OUT_DIM), jnp.float32, -bound2, bound2)
    b2 = jax.random.uniform(k4, (1, OUT_DIM), jnp.float32, -bound2, bound2)
    return w1, b1, w2, b2


def reference_forward(x, w1, b1, w2, b2, compute_dtype=jnp.float32):
    xc = x.astype(compute_dtype)
    w1c = w1.astype(compute_dtype)
    h = jnp.maximum(
        jnp.dot(xc, w1c, preferred_element_type=jnp.float32) + b1, 0.0)
    logits = jnp.dot(h, w2, preferred_element_type=jnp.float32) + b2
    return jax.nn.softmax(logits, axis=1)


if __name__ == "__main__":
    key = jax.random.PRNGKey(0)
    kx, kp = jax.random.split(key)

    B = 256
    x = jax.random.normal(kx, (B, IN_DIM), jnp.float32)
    w1, b1, w2, b2 = init_params(kp)

    out = mlp_forward(x, w1, b1, w2, b2, bm=256, use_bf16=True)
    out = jax.block_until_ready(out)
    assert out.shape == (B, OUT_DIM)

    # Tight check against a reference using the same bf16 streaming.
    ref_bf16 = reference_forward(x, w1, b1, w2, b2, compute_dtype=jnp.bfloat16)
    assert jnp.allclose(out, ref_bf16, atol=5e-3, rtol=5e-3)

    # Looser check against the original full-f32 module semantics.
    ref_f32 = reference_forward(x, w1, b1, w2, b2)
    assert jnp.allclose(out, ref_f32, atol=3e-2, rtol=3e-2)

    # Rows of a softmax sum to 1 (approx reciprocal -> small tolerance).
    assert jnp.allclose(jnp.sum(out, axis=1), jnp.ones((B,)), atol=5e-3)

    # Exercise a batch that is not a multiple of the tile (padding path).
    B2 = 40
    x2 = jax.random.normal(kx, (B2, IN_DIM), jnp.float32)
    out2 = jax.block_until_ready(mlp_forward(x2, w1, b1, w2, b2))
    ref2 = reference_forward(x2, w1, b1, w2, b2, compute_dtype=jnp.bfloat16)
    assert out2.shape == (B2, OUT_DIM)
    assert jnp.allclose(out2, ref2, atol=5e-3, rtol=5e-3)

    print("KERNEL_OK")
</pallas_src>

<mosaic_0001>
module attributes {stable_mosaic.version = 11 : i64} {
  func.func @mlp_kernel(%arg0: i32, %arg1: memref<256x784xbf16, #tpu.memory_space<vmem>>, %arg2: memref<784x128xbf16, #tpu.memory_space<vmem>>, %arg3: memref<1x128xf32, #tpu.memory_space<vmem>>, %arg4: memref<128x128xf32, #tpu.memory_space<vmem>>, %arg5: memref<1x128xf32, #tpu.memory_space<vmem>>, %arg6: memref<256x128xf32, #tpu.memory_space<vmem>>) attributes {dimension_semantics = [#tpu.dimension_semantics<parallel>], iteration_bounds = array<i64: 1>, scalar_prefetch = 0 : i64, scratch_operands = 0 : i64, tpu.core_type = #tpu.core_type<tc>, window_params = [{transform_indices = @transform_0, window_bounds = array<i64: 256, 784>}, {pipeline_mode = #tpu.pipeline_mode<synchronous>, transform_indices = @transform_1, window_bounds = array<i64: 784, 128>}, {pipeline_mode = #tpu.pipeline_mode<synchronous>, transform_indices = @transform_2, window_bounds = array<i64: 1, 128>}, {pipeline_mode = #tpu.pipeline_mode<synchronous>, transform_indices = @transform_3, window_bounds = array<i64: 128, 128>}, {pipeline_mode = #tpu.pipeline_mode<synchronous>, transform_indices = @transform_4, window_bounds = array<i64: 1, 128>}, {transform_indices = @transform_5, window_bounds = array<i64: 256, 128>}]} {
    %c0 = arith.constant 0 : index
    %c0_0 = arith.constant 0 : index
    %0 = vector.load %arg1[%c0, %c0_0] : memref<256x784xbf16, #tpu.memory_space<vmem>>, vector<256x784xbf16>
    %c0_1 = arith.constant 0 : index
    %c0_2 = arith.constant 0 : index
    %1 = vector.load %arg2[%c0_1, %c0_2] : memref<784x128xbf16, #tpu.memory_space<vmem>>, vector<784x128xbf16>
    %cst = arith.constant dense<0.000000e+00> : vector<256x128xf32>
    %2 = tpu.matmul %0, %1, %cst {dimension_numbers = #tpu.dot_dimension_numbers<[1], [0], [0], [1], [0, 0, 1, 1], [], []>} : vector<256x784xbf16>, vector<784x128xbf16>, vector<256x128xf32> -> vector<256x128xf32>
    %c0_3 = arith.constant 0 : index
    %c0_4 = arith.constant 0 : index
    %3 = vector.load %arg3[%c0_3, %c0_4] : memref<1x128xf32, #tpu.memory_space<vmem>>, vector<1x128xf32>
    %4 = vector.broadcast %3 : vector<1x128xf32> to vector<256x128xf32>
    %5 = arith.addf %2, %4 : vector<256x128xf32>
    %cst_5 = arith.constant 0.000000e+00 : f32
    %6 = vector.broadcast %cst_5 : f32 to vector<256x128xf32>
    %7 = arith.maximumf %5, %6 : vector<256x128xf32>
    %c0_6 = arith.constant 0 : index
    %c0_7 = arith.constant 0 : index
    %8 = vector.load %arg4[%c0_6, %c0_7] : memref<128x128xf32, #tpu.memory_space<vmem>>, vector<128x128xf32>
    %cst_8 = arith.constant dense<0.000000e+00> : vector<256x128xf32>
    %9 = tpu.matmul %7, %8, %cst_8 {dimension_numbers = #tpu.dot_dimension_numbers<[1], [0], [0], [1], [0, 0, 1, 1], [], []>} : vector<256x128xf32>, vector<128x128xf32>, vector<256x128xf32> -> vector<256x128xf32>
    %c0_9 = arith.constant 0 : index
    %c0_10 = arith.constant 0 : index
    %10 = vector.load %arg5[%c0_9, %c0_10] : memref<1x128xf32, #tpu.memory_space<vmem>>, vector<1x128xf32>
    %11 = vector.broadcast %10 : vector<1x128xf32> to vector<256x128xf32>
    %12 = arith.addf %9, %11 : vector<256x128xf32>
    %cst_11 = arith.constant dense<0xFF800000> : vector<256xf32>
    %13 = vector.multi_reduction <maximumf>, %12, %cst_11 [1] : vector<256x128xf32> to vector<256xf32>
    %14 = vector.shape_cast %13 : vector<256xf32> to vector<256x1xf32>
    %15 = vector.broadcast %14 : vector<256x1xf32> to vector<256x128xf32>
    %16 = arith.subf %12, %15 : vector<256x128xf32>
    %17 = math.exp %16 : vector<256x128xf32>
    %cst_12 = arith.constant dense<0.000000e+00> : vector<256xf32>
    %18 = vector.multi_reduction <add>, %17, %cst_12 [1] : vector<256x128xf32> to vector<256xf32>
    %19 = vector.shape_cast %18 : vector<256xf32> to vector<256x1xf32>
    %20 = tpu.reciprocal %19 {approx = true} : vector<256x1xf32> -> vector<256x1xf32>
    %21 = vector.broadcast %20 : vector<256x1xf32> to vector<256x128xf32>
    %22 = arith.mulf %17, %21 : vector<256x128xf32>
    %c0_13 = arith.constant 0 : index
    %c0_14 = arith.constant 0 : index
    %23 = vector.load %arg6[%c0_13, %c0_14] : memref<256x128xf32, #tpu.memory_space<vmem>>, vector<256x128xf32>
    tpu.vector_store %arg6[%c0_13, %c0_14], %22 {strides = array<i32>} : memref<256x128xf32, #tpu.memory_space<vmem>>, vector<256x128xf32>,
    return
  }
  func.func @transform_0(%arg0: i32) -> (i32, i32) {
    %c0_i32 = arith.constant 0 : i32
    %c0_i32_0 = arith.constant 0 : i32
    return %arg0, %c0_i32 : i32, i32
  }
  func.func @transform_1(%arg0: i32) -> (i32, i32) {
    %c0_i32 = arith.constant 0 : i32
    %c0_i32_0 = arith.constant 0 : i32
    %c0_i32_1 = arith.constant 0 : i32
    return %c0_i32, %c0_i32_0 : i32, i32
  }
  func.func @transform_2(%arg0: i32) -> (i32, i32) {
    %c0_i32 = arith.constant 0 : i32
    %c0_i32_0 = arith.constant 0 : i32
    %c0_i32_1 = arith.constant 0 : i32
    return %c0_i32, %c0_i32_0 : i32, i32
  }
  func.func @transform_3(%arg0: i32) -> (i32, i32) {
    %c0_i32 = arith.constant 0 : i32
    %c0_i32_0 = arith.constant 0 : i32
    %c0_i32_1 = arith.constant 0 : i32
    return %c0_i32, %c0_i32_0 : i32, i32
  }
  func.func @transform_4(%arg0: i32) -> (i32, i32) {
    %c0_i32 = arith.constant 0 : i32
    %c0_i32_0 = arith.constant 0 : i32
    %c0_i32_1 = arith.constant 0 : i32
    return %c0_i32, %c0_i32_0 : i32, i32
  }
  func.func @transform_5(%arg0: i32) -> (i32, i32) {
    %c0_i32 = arith.constant 0 : i32
    %c0_i32_0 = arith.constant 0 : i32
    return %arg0, %c0_i32 : i32, i32
  }
}

</mosaic_0001>

<bundles_post_ra>
// kernel: tpu_custom_call.1
= control target key start
LH: loop header
LB: loop body
LE: loop exit
PB: predicated region body
PF: predicated region fallthrough
CT: control target
= control target key end

     0   :  { %s4483_s0 = inlined_call_operand.vmem [shape: bf16[256,784], index: 0, kind: input, shape index: {}]   ;;  %s4484_s1 = inlined_call_operand.vmem [shape: bf16[784,128], index: 1, kind: input, shape index: {}]   ;;  %s4485_s2 = inlined_call_operand.vmem [shape: f32[1,128], index: 2, kind: input, shape index: {}]   ;;  %s4486_s3 = inlined_call_operand.vmem [shape: f32[128,128], index: 3, kind: input, shape index: {}]   ;;  %s4487_s4 = inlined_call_operand.vmem [shape: f32[1,128], index: 4, kind: input, shape index: {}]   ;;  %s4488_s5 = inlined_call_operand.hbm [shape: f32[256,128], index: 5, kind: output, shape index: {}]  }
   0x1   :  { %v3115_v0 = vld [vmem:[%s4484_s1 + $0x78] sm:$0xff]   ;;  %v3119_v4 = vld [vmem:[%s4484_s1 + $0x70] sm:$0xff]   ;;  %v3123_v8 = vld [vmem:[%s4484_s1 + $0x68] sm:$0xff]  }
   0x2   :  { %v3116_v1 = vld [vmem:[%s4484_s1 + $0x38] sm:$0xff]   ;;  %2597 = vmatprep.subr.bf16.mxu0 %v3115_v0  ;;  %v3120_v5 = vld [vmem:[%s4484_s1 + $0x30] sm:$0xff]   ;;  %v3124_v9 = vld [vmem:[%s4484_s1 + $0x28] sm:$0xff]  }
   0x3   :  { %v3117_v2 = vld [vmem:[%s4484_s1 + $0xf8] sm:$0xff]   ;;  %2598 = vmatpush3.bf16.msra.mxu0 %v3116_v1  ;;  %v3121_v6 = vld [vmem:[%s4484_s1 + $0xf0] sm:$0xff]   ;;  %v3125_v10 = vld [vmem:[%s4484_s1 + $0xe8] sm:$0xff]  }
   0x4   :  { %v3118_v3 = vld [vmem:[%s4484_s1 + $0xb8] sm:$0xff]   ;;  %2709 = vmatprep.subr.bf16.mxu1 %v3117_v2  ;;  %2599 = vmatprep.subr.bf16.mxu0 %v3119_v4  ;;  %v3122_v7 = vld [vmem:[%s4484_s1 + $0xb0] sm:$0xff]   ;;  %v3126_v11 = vld [vmem:[%s4484_s1 + $0xa8] sm:$0xff]  }
   0x5   :  { %2710 = vmatpush3.bf16.msra.mxu1 %v3118_v3  ;;  %v3127_v12 = vld [vmem:[%s4484_s1 + $0x60] sm:$0xff]   ;;  %v3131_v16 = vld [vmem:[%s4484_s1 + $0x58] sm:$0xff]   ;;  %v3135_v20 = vld [vmem:[%s4484_s1 + $0x50] sm:$0xff]  }
   0x6   :  { %2711 = vmatprep.subr.bf16.mxu1 %v3121_v6  ;;  %v3128_v13 = vld [vmem:[%s4484_s1 + $0x20] sm:$0xff]   ;;  %v3132_v17 = vld [vmem:[%s4484_s1 + $0x18] sm:$0xff]   ;;  %v3136_v21 = vld [vmem:[%s4484_s1 + $0x10] sm:$0xff]  }
   0x7   :  { %2600 = vmatpush3.bf16.msra.mxu0 %v3120_v5  ;;  %v3129_v14 = vld [vmem:[%s4484_s1 + $0xe0] sm:$0xff]   ;;  %v3133_v18 = vld [vmem:[%s4484_s1 + $0xd8] sm:$0xff]   ;;  %v3137_v22 = vld [vmem:[%s4484_s1 + $0xd0] sm:$0xff]  }
   0x8   :  { %2601 = vmatprep.subr.bf16.mxu0 %v3123_v8  ;;  %v3130_v15 = vld [vmem:[%s4484_s1 + $0xa0] sm:$0xff]   ;;  %v3134_v19 = vld [vmem:[%s4484_s1 + $0x98] sm:$0xff]   ;;  %v3138_v23 = vld [vmem:[%s4484_s1 + $0x90] sm:$0xff]  }
   0x9   :  { %2712 = vmatpush3.bf16.msra.mxu1 %v3122_v7  ;;  %v3139_v24 = vld [vmem:[%s4484_s1 + $0x48] sm:$0xff]   ;;  %v3143_v28 = vld [vmem:[%s4484_s1 + $0x40] sm:$0xff]   ;;  %v3150_v34 = vld [vmem:[%s4484_s1 + $0x178] sm:$0xff]  }
   0xa   :  { %2713 = vmatprep.subr.bf16.mxu1 %v3125_v10  ;;  %v3140_v25 = vld [vmem:[%s4484_s1 + $0x8] sm:$0xff]   ;;  %v3144_v29 = vld [vmem:[%s4484_s1] sm:$0xff]   ;;  %v3154_v37 = vld [vmem:[%s4484_s1 + $0x138] sm:$0xff]  }
   0xb   :  { %2602 = vmatpush3.bf16.msra.mxu0 %v3124_v9  ;;  %v3141_v26 = vld [vmem:[%s4484_s1 + $0xc8] sm:$0xff]   ;;  %v3145_v30 = vld [vmem:[%s4484_s1 + $0xc0] sm:$0xff]   ;;  %v3155_v38 = vld [vmem:[%s4483_s0 + $0x3c] ss:$28 sps:$4 sm:$0xff]  }
   0xc   :  { %2603 = vmatprep.subr.bf16.mxu0 %v3127_v12  ;;  %v3142_v27 = vld [vmem:[%s4484_s1 + $0x88] sm:$0xff]   ;;  %v3146_v31 = vld [vmem:[%s4483_s0] ss:$28 sps:$4 sm:$0xff]   ;;  %v3157_v40 = vld [vmem:[%s4483_s0 + $0x38] ss:$28 sps:$4 sm:$0xff]  }
   0xd   :  { %2714 = vmatpush3.bf16.msra.mxu1 %v3126_v11  ;;  %v3148_v32 = vld [vmem:[%s4483_s0 + $0x4] ss:$28 sps:$4 sm:$0xff]   ;;  %v3153_v36 = vld [vmem:[%s4483_s0 + $0xc] ss:$28 sps:$4 sm:$0xff]   ;;  %v3161_v41 = vld [vmem:[%s4483_s0 + $0x74] ss:$28 sps:$4 sm:$0xff]  }
   0xe   :  { %2715 = vmatprep.subr.bf16.mxu1 %v3129_v14  ;;  %v3149_v33 = vld [vmem:[%s4484_s1 + $0x80] sm:$0xff]   ;;  %1190 = vmatprep.mubr.bf16.mxu0 %v3148_v32  ;;  %v3164_v42 = vld [vmem:[%s4484_s1 + $0x170] sm:$0xff]   ;;  %v3165_v44 = vld [vmem:[%s4483_s0 + $0x7c] ss:$28 sps:$4 sm:$0xff]  }
   0xf   :  { %2604 = vmatpush3.bf16.msra.mxu0 %v3128_v13  ;;  %v3151_v35 = vld [vmem:[%s4483_s0 + $0x8] ss:$28 sps:$4 sm:$0xff]   ;;  %1351 = vmatprep.mubr.bf16.mxu1 %v3153_v36  ;;  %v3160_v43 = vld [vmem:[%s4483_s0 + $0x40] ss:$28 sps:$4 sm:$0xff]   ;;  %v3167_v45 = vld [vmem:[%s4484_s1 + $0x130] sm:$0xff]  }
  0x10   :  { %2605 = vmatprep.subr.bf16.mxu0 %v3131_v16  ;;  %v3158_v39 = vld [vmem:[%s4483_s0 + $0x44] ss:$28 sps:$4 sm:$0xff]   ;;  %v3163_v46 = vld [vmem:[%s4483_s0 + $0x70] ss:$28 sps:$4 sm:$0xff]   ;;  %v3168_v49 = vld [vmem:[%s4483_s0 + $0x78] ss:$28 sps:$4 sm:$0xff]  }
  0x11   :  { %2716 = vmatpush3.bf16.msra.mxu1 %v3130_v15  ;;  %v3169_v47 = vld [vmem:[%s4483_s0 + $0xac] ss:$28 sps:$4 sm:$0xff]   ;;  %v3172_v51 = vld [vmem:[%s4483_s0 + $0xb4] ss:$28 sps:$4 sm:$0xff]   ;;  %v3175_v53 = vld [vmem:[%s4483_s0 + $0xe4] ss:$28 sps:$4 sm:$0xff]  }
  0x12   :  { %2717 = vmatprep.subr.bf16.mxu1 %v3133_v18  ;;  %v3178_v48 = vld [vmem:[%s4484_s1 + $0x168] sm:$0xff]   ;;  %v3192_v54 = vld [vmem:[%s4484_s1 + $0x160] sm:$0xff]   ;;  %v3183_v60 = vld [vmem:[%s4483_s0 + $0x11c] ss:$28 sps:$4 sm:$0xff]  }
  0x13   :  { %2606 = vmatpush3.bf16.msra.mxu0 %v3132_v17  ;;  %v3181_v50 = vld [vmem:[%s4484_s1 + $0x128] sm:$0xff]   ;;  %v3195_v56 = vld [vmem:[%s4484_s1 + $0x120] sm:$0xff]   ;;  %v3207_v61 = vld [vmem:[%s4484_s1 + $0x158] sm:$0xff]  }
  0x14   :  { %2607 = vmatprep.subr.bf16.mxu0 %v3135_v20  ;;  %v3171_v52 = vld [vmem:[%s4483_s0 + $0xa8] ss:$28 sps:$4 sm:$0xff]   ;;  %v3174_v55 = vld [vmem:[%s4483_s0 + $0xb0] ss:$28 sps:$4 sm:$0xff]   ;;  %v3177_v59 = vld [vmem:[%s4483_s0 + $0xe0] ss:$28 sps:$4 sm:$0xff]  }
  0x15   :  { %2718 = vmatpush3.bf16.msra.mxu1 %v3134_v19  ;;  %v3179_v57 = vld [vmem:[%s4483_s0 + $0xec] ss:$28 sps:$4 sm:$0xff]   ;;  %v3203_v58 = vld [vmem:[%s4484_s1 + $0x180] sm:$0xff]   ;;  %v3210_v63 = vld [vmem:[%s4484_s1 + $0x118] sm:$0xff]  }
  0x16   :  { %2719 = vmatprep.subr.bf16.mxu1 %v3137_v22  ;;  %v3182_v62 = vld [vmem:[%s4483_s0 + $0xe8] ss:$28 sps:$4 sm:$0xff]   ;;  %v3185_v1 = vld [vmem:[%s4483_s0 + $0x118] ss:$28 sps:$4 sm:$0xff]   ;;  %v3188_v5 = vld [vmem:[%s4483_s0 + $0x120] ss:$28 sps:$4 sm:$0xff]  }
  0x17   :  { %2608 = vmatpush3.bf16.msra.mxu0 %v3136_v21  ;;  %v3186_v0 = vld [vmem:[%s4483_s0 + $0x124] ss:$28 sps:$4 sm:$0xff]   ;;  %v3221_v2 = vld [vmem:[%s4484_s1 + $0x150] sm:$0xff]   ;;  %v3193_v6 = vld [vmem:[%s4483_s0 + $0x15c] ss:$28 sps:$4 sm:$0xff]  }
  0x18   :  { %2609 = vmatprep.subr.bf16.mxu0 %v3139_v24  ;;  %v3189_v3 = vld [vmem:[%s4483_s0 + $0x154] ss:$28 sps:$4 sm:$0xff]   ;;  %v3235_v8 = vld [vmem:[%s4484_s1 + $0x148] sm:$0xff]   ;;  %v3249_v13 = vld [vmem:[%s4484_s1 + $0x140] sm:$0xff]  }
  0x19   :  { %2720 = vmatpush3.bf16.msra.mxu1 %v3138_v23  ;;  %v3224_v4 = vld [vmem:[%s4484_s1 + $0x110] sm:$0xff]   ;;  %v3197_v9 = vld [vmem:[%s4483_s0 + $0x18c] ss:$28 sps:$4 sm:$0xff]   ;;  %v3204_v15 = vld [vmem:[%s4483_s0 + $0x1c4] ss:$28 sps:$4 sm:$0xff]  }
  0x1a   :  { %2721 = vmatprep.subr.bf16.mxu1 %v3141_v26  ;;  %v3191_v7 = vld [vmem:[%s4483_s0 + $0x150] ss:$28 sps:$4 sm:$0xff]   ;;  %v3196_v11 = vld [vmem:[%s4483_s0 + $0x158] ss:$28 sps:$4 sm:$0xff]   ;;  %v3199_v14 = vld [vmem:[%s4483_s0 + $0x188] ss:$28 sps:$4 sm:$0xff]  }
  0x1b   :  { %2610 = vmatpush3.bf16.msra.mxu0 %v3140_v25  ;;  %v3238_v10 = vld [vmem:[%s4484_s1 + $0x108] sm:$0xff]   ;;  %v3200_v12 = vld [vmem:[%s4483_s0 + $0x194] ss:$28 sps:$4 sm:$0xff]   ;;  %v3252_v16 = vld [vmem:[%s4484_s1 + $0x100] sm:$0xff]  }
  0x1c   :  { %2611 = vmatprep.subr.bf16.mxu0 %v3143_v28  ;;  %v3202_v17 = vld [vmem:[%s4483_s0 + $0x190] ss:$28 sps:$4 sm:$0xff]   ;;  %v3206_v19 = vld [vmem:[%s4483_s0 + $0x1c0] ss:$28 sps:$4 sm:$0xff]   ;;  %v3211_v21 = vld [vmem:[%s4483_s0 + $0x1c8] ss:$28 sps:$4 sm:$0xff]  }
  0x1d   :  { %2722 = vmatpush3.bf16.msra.mxu1 %v3142_v27  ;;  %v3208_v18 = vld [vmem:[%s4483_s0 + $0x1cc] ss:$28 sps:$4 sm:$0xff]   ;;  %v3212_v20 = vld [vmem:[%s4483_s0 + $0x1fc] ss:$28 sps:$4 sm:$0xff]   ;;  %v3215_v22 = vld [vmem:[%s4483_s0 + $0x204] ss:$28 sps:$4 sm:$0xff]  }
  0x1e   :  { %2723 = vmatprep.subr.bf16.mxu1 %v3145_v30  ;;  %v3214_v23 = vld [vmem:[%s4483_s0 + $0x1f8] ss:$28 sps:$4 sm:$0xff]   ;;  %v3217_v25 = vld [vmem:[%s4483_s0 + $0x200] ss:$28 sps:$4 sm:$0xff]   ;;  %v3220_v27 = vld [vmem:[%s4483_s0 + $0x230] ss:$28 sps:$4 sm:$0xff]  }
  0x1f   :  { %2612 = vmatpush3.bf16.msra.mxu0 %v3144_v29  ;;  %v3218_v24 = vld [vmem:[%s4483_s0 + $0x234] ss:$28 sps:$4 sm:$0xff]   ;;  %v3222_v26 = vld [vmem:[%s4483_s0 + $0x23c] ss:$28 sps:$4 sm:$0xff]   ;;  %v3226_v28 = vld [vmem:[%s4483_s0 + $0x26c] ss:$28 sps:$4 sm:$0xff]  }
  0x20   :  { %2821 = vmatprep.subr.bf16.mxu0 %v3150_v34  ;;  %v3225_v29 = vld [vmem:[%s4483_s0 + $0x238] ss:$28 sps:$4 sm:$0xff]   ;;  %v3232_v32 = vld [vmem:[%s4483_s0 + $0x2a4] ss:$28 sps:$4 sm:$0xff]   ;;  %v3236_v34 = vld [vmem:[%s4483_s0 + $0x2ac] ss:$28 sps:$4 sm:$0xff]  }
  0x21   :  { %2724 = vmatpush3.bf16.msra.mxu1 %v3149_v33  ;;  %v3229_v30 = vld [vmem:[%s4483_s0 + $0x274] ss:$28 sps:$4 sm:$0xff]  }
  0x22   :  { %1191 = vmatmul.mubr.bf16.vlgmr.msra.gmra.mxu0 %v3146_v31  ;;  %2998 = vmatprep.subr.bf16.mxu1 %v3203_v58  ;;  %v3228_v31 = vld [vmem:[%s4483_s0 + $0x268] ss:$28 sps:$4 sm:$0xff]   ;;  %v3231_v33 = vld [vmem:[%s4483_s0 + $0x270] ss:$28 sps:$4 sm:$0xff]  }
  0x23   :  { %2822 = vmatpush3.bf16.msra.mxu0 %v3154_v37  ;;  %1198 = vmatprep.mubr.bf16.mxu0 %v3155_v38 }
  0x24   :  { %1352 = vmatmul.mubr.bf16.vlgmr.msra.gmra.mxu1 %v3151_v35  ;;  %2823 = vmatprep.subr.bf16.mxu0 %v3164_v42 }
  0x25   :  { %1359 = vmatprep.mubr.bf16.mxu1 %v3158_v39  ;;  %2999 = vmatpush3.bf16.msra.mxu1 %v3203_v58 }
  0x27   :  { %2824 = vmatpush3.bf16.msra.mxu0 %v3167_v45 }
  0x28   :  { %2825 = vmatprep.subr.bf16.mxu0 %v3178_v48 }
  0x2a   :  { %1199 = vmatmul.mubr.bf16.gmra.mxu0 %v3157_v40 }
  0x2b   :  { %1206 = vmatprep.mubr.bf16.mxu0 %v3161_v41  ;;  %2826 = vmatpush3.bf16.msra.mxu0 %v3181_v50 }
  0x2c   :  { %1360 = vmatmul.mubr.bf16.gmra.mxu1 %v3160_v43  ;;  %2827 = vmatprep.subr.bf16.mxu0 %v3192_v54 }
  0x2d   :  { %1367 = vmatprep.mubr.bf16.mxu1 %v3165_v44 }
  0x2f   :  { %2828 = vmatpush3.bf16.msra.mxu0 %v3195_v56 }
  0x30   :  { %2829 = vmatprep.subr.bf16.mxu0 %v3207_v61 }
  0x32   :  { %1207 = vmatmul.mubr.bf16.gmra.mxu0 %v3163_v46 }
  0x33   :  { %1214 = vmatprep.mubr.bf16.mxu0 %v3169_v47  ;;  %2830 = vmatpush3.bf16.msra.mxu0 %v3210_v63 }
  0x34   :  { %1368 = vmatmul.mubr.bf16.gmra.mxu1 %v3168_v49  ;;  %2831 = vmatprep.subr.bf16.mxu0 %v3221_v2 }
  0x35   :  { %1375 = vmatprep.mubr.bf16.mxu1 %v3172_v51 }
  0x37   :  { %2832 = vmatpush3.bf16.msra.mxu0 %v3224_v4 }
  0x38   :  { %2833 = vmatprep.subr.bf16.mxu0 %v3235_v8 }
  0x3a   :  { %1215 = vmatmul.mubr.bf16.gmra.mxu0 %v3171_v52 }
  0x3b   :  { %1222 = vmatprep.mubr.bf16.mxu0 %v3175_v53  ;;  %2834 = vmatpush3.bf16.msra.mxu0 %v3238_v10 }
  0x3c   :  { %1376 = vmatmul.mubr.bf16.gmra.mxu1 %v3174_v55  ;;  %2835 = vmatprep.subr.bf16.mxu0 %v3249_v13 }
  0x3d   :  { %1383 = vmatprep.mubr.bf16.mxu1 %v3179_v57 }
  0x3f   :  { %2836 = vmatpush3.bf16.msra.mxu0 %v3252_v16 }
  0x42   :  { %1223 = vmatmul.mubr.bf16.gmra.mxu0 %v3177_v59 }
  0x43   :  { %1230 = vmatprep.mubr.bf16.mxu0 %v3183_v60 }
  0x44   :  { %1384 = vmatmul.mubr.bf16.gmra.mxu1 %v3182_v62 }
  0x45   :  { %1391 = vmatprep.mubr.bf16.mxu1 %v3186_v0 }
  0x4a   :  { %1231 = vmatmul.mubr.bf16.gmra.mxu0 %v3185_v1 }
  0x4b   :  { %1238 = vmatprep.mubr.bf16.mxu0 %v3189_v3 }
  0x4c   :  { %1392 = vmatmul.mubr.bf16.gmra.mxu1 %v3188_v5 }
  0x4d   :  { %1399 = vmatprep.mubr.bf16.mxu1 %v3193_v6 }
  0x52   :  { %1239 = vmatmul.mubr.bf16.gmra.mxu0 %v3191_v7 }
  0x53   :  { %1246 = vmatprep.mubr.bf16.mxu0 %v3197_v9 }
  0x54   :  { %1400 = vmatmul.mubr.bf16.gmra.mxu1 %v3196_v11 }
  0x55   :  { %1407 = vmatprep.mubr.bf16.mxu1 %v3200_v12 }
  0x5a   :  { %1247 = vmatmul.mubr.bf16.gmra.mxu0 %v3199_v14 }
  0x5b   :  { %1254 = vmatprep.mubr.bf16.mxu0 %v3204_v15 }
  0x5c   :  { %1408 = vmatmul.mubr.bf16.gmra.mxu1 %v3202_v17 }
  0x5d   :  { %1415 = vmatprep.mubr.bf16.mxu1 %v3208_v18 }
  0x62   :  { %1255 = vmatmul.mubr.bf16.gmra.mxu0 %v3206_v19 }
  0x63   :  { %1262 = vmatprep.mubr.bf16.mxu0 %v3212_v20 }
  0x64   :  { %1416 = vmatmul.mubr.bf16.gmra.mxu1 %v3211_v21 }
  0x65   :  { %1423 = vmatprep.mubr.bf16.mxu1 %v3215_v22 }
  0x6a   :  { %1263 = vmatmul.mubr.bf16.gmra.mxu0 %v3214_v23 }
  0x6b   :  { %1270 = vmatprep.mubr.bf16.mxu0 %v3218_v24 }
  0x6c   :  { %1424 = vmatmul.mubr.bf16.gmra.mxu1 %v3217_v25 }
  0x6d   :  { %1431 = vmatprep.mubr.bf16.mxu1 %v3222_v26 }
  0x72   :  { %1271 = vmatmul.mubr.bf16.gmra.mxu0 %v3220_v27 }
  0x73   :  { %1278 = vmatprep.mubr.bf16.mxu0 %v3226_v28 }
  0x74   :  { %1432 = vmatmul.mubr.bf16.gmra.mxu1 %v3225_v29 }
  0x75   :  { %1439 = vmatprep.mubr.bf16.mxu1 %v3229_v30 }
  0x7a   :  { %1279 = vmatmul.mubr.bf16.gmra.mxu0 %v3228_v31 }
  0x7b   :  { %1286 = vmatprep.mubr.bf16.mxu0 %v3232_v32 }
  0x7c   :  { %10 = vsyncpa [#allocation3], 0  ;;  %1440 = vmatmul.mubr.bf16.gmra.mxu1 %v3231_v33  ;;  %v3234_v35 = vld [vmem:[%s4483_s0 + $0x2a0] ss:$28 sps:$4 sm:$0xff]   ;;  %v3239_v37 = vld [vmem:[%s4483_s0 + $0x2a8] ss:$28 sps:$4 sm:$0xff]  }
  0x7d   :  { %1447 = vmatprep.mubr.bf16.mxu1 %v3236_v34  ;;  %v3240_v36 = vld [vmem:[%s4483_s0 + $0x2dc] ss:$28 sps:$4 sm:$0xff]   ;;  %v3243_v38 = vld [vmem:[%s4483_s0 + $0x2e4] ss:$28 sps:$4 sm:$0xff]   ;;  %v3246_v40 = vld [vmem:[%s4483_s0 + $0x314] ss:$28 sps:$4 sm:$0xff]  }
  0x7e   :  { %v3242_v39 = vld [vmem:[%s4483_s0 + $0x2d8] ss:$28 sps:$4 sm:$0xff]   ;;  %v3245_v41 = vld [vmem:[%s4483_s0 + $0x2e0] ss:$28 sps:$4 sm:$0xff]   ;;  %v3248_v43 = vld [vmem:[%s4483_s0 + $0x310] ss:$28 sps:$4 sm:$0xff]  }
  0x7f   :  { %v3250_v42 = vld [vmem:[%s4483_s0 + $0x31c] ss:$28 sps:$4 sm:$0xff]   ;;  %v3254_v44 = vld [vmem:[%s4483_s0 + $0x34c] ss:$28 sps:$4 sm:$0xff]   ;;  %v3257_v46 = vld [vmem:[%s4483_s0 + $0x354] ss:$28 sps:$4 sm:$0xff]  }
  0x80   :  { %v3253_v45 = vld [vmem:[%s4483_s0 + $0x318] ss:$28 sps:$4 sm:$0xff]   ;;  %v3256_v47 = vld [vmem:[%s4483_s0 + $0x348] ss:$28 sps:$4 sm:$0xff]   ;;  %v3259_v49 = vld [vmem:[%s4483_s0 + $0x350] ss:$28 sps:$4 sm:$0xff]  }
  0x81   :  { %v3262_v48 = vld [vmem:[%s4483_s0 + $0x14] ss:$28 sps:$4 sm:$0xff]   ;;  %vm1109_vm0 = vcmask 130048   ;;  %v3265_v52 = vld [vmem:[%s4483_s0 + $0x4c] ss:$28 sps:$4 sm:$0xff]   ;;  %v1849_v14 = vld [vmem:[%s4486_s3 + $0x78] sm:$0xff] }
  0x82   :  { %1287 = vmatmul.mubr.bf16.gmra.mxu0 %v3234_v35  ;;  %v3263_v50 = vld [vmem:[%s4483_s0 + $0x18] ss:$28 sps:$4 sm:$0xff]   ;;  %v3260_v51 = vld [vmem:[%s4483_s0 + $0x10] ss:$28 sps:$4 sm:$0xff]   ;;  %v3271_v54 = vld [vmem:[%s4483_s0 + $0x88] ss:$28 sps:$4 sm:$0xff]   ;;  %3032 = vmatprep.subr.mxu1 %v1849_v14 }
  0x83   :  { %1294 = vmatprep.mubr.bf16.mxu0 %v3240_v36  ;;  %v3264_v53 = vld [vmem:[%s4483_s0 + $0x50] ss:$28 sps:$4 sm:$0xff]   ;;  %v3267_v55 = vld [vmem:[%s4483_s0 + $0x48] ss:$28 sps:$4 sm:$0xff]   ;;  %v3272_v57 = vld [vmem:[%s4483_s0 + $0xc0] ss:$28 sps:$4 sm:$0xff]  }
  0x84   :  { %1448 = vmatmul.mubr.bf16.gmra.mxu1 %v3239_v37  ;;  %v3268_v56 = vld [vmem:[%s4483_s0 + $0x84] ss:$28 sps:$4 sm:$0xff]   ;;  %v3279_v58 = vld [vmem:[%s4483_s0 + $0xf8] ss:$28 sps:$4 sm:$0xff]   ;;  %v3280_v61 = vld [vmem:[%s4483_s0 + $0x130] ss:$28 sps:$4 sm:$0xff]  }
  0x85   :  { %1455 = vmatprep.mubr.bf16.mxu1 %v3243_v38  ;;  %v3270_v59 = vld [vmem:[%s4483_s0 + $0x80] ss:$28 sps:$4 sm:$0xff]   ;;  %v3287_v62 = vld [vmem:[%s4483_s0 + $0x168] ss:$28 sps:$4 sm:$0xff]   ;;  %v3275_v63 = vld [vmem:[%s4483_s0 + $0xb8] ss:$28 sps:$4 sm:$0xff]  }
  0x86   :  { %v3273_v60 = vld [vmem:[%s4483_s0 + $0xbc] ss:$28 sps:$4 sm:$0xff]   ;;  %v3276_v0 = vld [vmem:[%s4483_s0 + $0xf4] ss:$28 sps:$4 sm:$0xff]   ;;  %v3281_v4 = vld [vmem:[%s4483_s0 + $0x12c] ss:$28 sps:$4 sm:$0xff]  }
  0x87   :  { %v3288_v1 = vld [vmem:[%s4483_s0 + $0x1a0] ss:$28 sps:$4 sm:$0xff]   ;;  %v3295_v2 = vld [vmem:[%s4483_s0 + $0x1d8] ss:$28 sps:$4 sm:$0xff]   ;;  %v3278_v3 = vld [vmem:[%s4483_s0 + $0xf0] ss:$28 sps:$4 sm:$0xff]  }
  0x88   :  { %v3296_v5 = vld [vmem:[%s4483_s0 + $0x210] ss:$28 sps:$4 sm:$0xff]   ;;  %v3303_v6 = vld [vmem:[%s4483_s0 + $0x248] ss:$28 sps:$4 sm:$0xff]   ;;  %v3304_v9 = vld [vmem:[%s4483_s0 + $0x280] ss:$28 sps:$4 sm:$0xff]  }
  0x89   :  { %v3283_v7 = vld [vmem:[%s4483_s0 + $0x128] ss:$28 sps:$4 sm:$0xff]   ;;  %v3311_v10 = vld [vmem:[%s4483_s0 + $0x2b8] ss:$28 sps:$4 sm:$0xff]   ;;  %v3286_v11 = vld [vmem:[%s4483_s0 + $0x160] ss:$28 sps:$4 sm:$0xff]  }
  0x8a   :  { %1295 = vmatmul.mubr.bf16.gmra.mxu0 %v3242_v39  ;;  %v3284_v8 = vld [vmem:[%s4483_s0 + $0x164] ss:$28 sps:$4 sm:$0xff]   ;;  %v3289_v12 = vld [vmem:[%s4483_s0 + $0x19c] ss:$28 sps:$4 sm:$0xff]   ;;  %v3312_v13 = vld [vmem:[%s4483_s0 + $0x2f0] ss:$28 sps:$4 sm:$0xff]  }
  0x8b   :  { %1302 = vmatprep.mubr.bf16.mxu0 %v3246_v40  ;;  %v3319_v15 = vld [vmem:[%s4483_s0 + $0x328] ss:$28 sps:$4 sm:$0xff]   ;;  %v1848_v16 = vld [vmem:[%s4486_s3 + $0x70] sm:$0xff]  ;;  %v3320_v21 = vld [vmem:[%s4483_s0 + $0x360] ss:$28 sps:$4 sm:$0xff]  }
  0x8c   :  { %1456 = vmatmul.mubr.bf16.gmra.mxu1 %v3245_v41  ;;  %v1847_v17 = vld [vmem:[%s4486_s3 + $0x68] sm:$0xff]  ;;  %v3291_v18 = vld [vmem:[%s4483_s0 + $0x198] ss:$28 sps:$4 sm:$0xff]   ;;  %v1846_v20 = vld [vmem:[%s4486_s3 + $0x60] sm:$0xff] }
  0x8d   :  { %1463 = vmatprep.mubr.bf16.mxu1 %v3250_v42  ;;  %v3292_v19 = vld [vmem:[%s4483_s0 + $0x1d4] ss:$28 sps:$4 sm:$0xff]   ;;  %v1845_v22 = vld [vmem:[%s4486_s3 + $0x58] sm:$0xff]  ;;  %v1843_v24 = vld [vmem:[%s4486_s3 + $0x48] sm:$0xff] }
  0x8e   :  { %v1844_v23 = vld [vmem:[%s4486_s3 + $0x50] sm:$0xff]  ;;  %v3297_v26 = vld [vmem:[%s4483_s0 + $0x20c] ss:$28 sps:$4 sm:$0xff]   ;;  %v1842_v27 = vld [vmem:[%s4486_s3 + $0x40] sm:$0xff] }
  0x8f   :  { %v3294_v25 = vld [vmem:[%s4483_s0 + $0x1d0] ss:$28 sps:$4 sm:$0xff]   ;;  %v1841_v28 = vld [vmem:[%s4486_s3 + $0x38] sm:$0xff]  ;;  %v4000_v31 = vld [vmem:[%s4485_s2] ss:$0 sm:$0xff] }
  0x90   :  { %v1840_v30 = vld [vmem:[%s4486_s3 + $0x30] sm:$0xff]  ;;  %v1839_v35 = vld [vmem:[%s4486_s3 + $0x28] sm:$0xff]  ;;  %v1838_v38 = vld [vmem:[%s4486_s3 + $0x20] sm:$0xff] }
  0x91   :  { %v3299_v37 = vld [vmem:[%s4483_s0 + $0x208] ss:$28 sps:$4 sm:$0xff]  }
  0x92   :  { %1303 = vmatmul.mubr.bf16.gmra.mxu0 %v3248_v43  ;;  %v3300_v41 = vld [vmem:[%s4483_s0 + $0x244] ss:$28 sps:$4 sm:$0xff]  }
  0x93   :  { %1310 = vmatprep.mubr.bf16.mxu0 %v3254_v44 }
  0x94   :  { %1464 = vmatmul.mubr.bf16.gmra.mxu1 %v3253_v45 }
  0x95   :  { %1471 = vmatprep.mubr.bf16.mxu1 %v3257_v46  ;;  %v1837_v46 = vld [vmem:[%s4486_s3 + $0x18] sm:$0xff] }
  0x9a   :  { %1311 = vmatmul.mubr.bf16.gmra.mxu0 %v3256_v47 }
  0x9b   :  { %1512 = vmatprep.mubr.bf16.mxu0 %v3262_v48 }
  0x9c   :  { %1472 = vmatmul.mubr.bf16.gmra.mxu1 %v3259_v49 }
  0x9d   :  { %3000 = vmatprep.mubr.msk.bf16.mxu1 %vm1109_vm0, %v3263_v50 }
  0xa2   :  { %1513 = vmatmul.mubr.bf16.vlgmr.msra.gmra.mxu0 %v3260_v51  ;;  %v1836_v51 = vld [vmem:[%s4486_s3 + $0x10] sm:$0xff] }
  0xa3   :  { %1520 = vmatprep.mubr.bf16.mxu0 %v3265_v52 }
  0xa4   :  { %3001 = vmatmul.mubr.msk.bf16.vlgmr.msra.gmra.mxu1 %vm1109_vm0, %v3264_v53 }
  0xa5   :  { %3004 = vmatprep.mubr.msk.bf16.mxu1 %vm1109_vm0, %v3271_v54  ;;  %3033 = vmatpush3.msra.mxu1 %v1849_v14  ;;  %v3307_v14 = vld [vmem:[%s4483_s0 + $0x278] ss:$28 sps:$4 sm:$0xff]  }
  0xa6   :  { %3034 = vmatprep.subr.mxu1 %v1848_v16 }
  0xa7   :  { %3035 = vmatpush3.msra.mxu1 %v1848_v16 }
  0xa8   :  { %3036 = vmatprep.subr.mxu1 %v1847_v17 }
  0xa9   :  { %3037 = vmatpush3.msra.mxu1 %v1847_v17  ;;  %v3310_v17 = vld [vmem:[%s4483_s0 + $0x2b4] ss:$28 sps:$4 sm:$0xff]  }
  0xaa   :  { %1521 = vmatmul.mubr.bf16.gmra.mxu0 %v3267_v55  ;;  %3038 = vmatprep.subr.mxu1 %v1846_v20 }
  0xab   :  { %1528 = vmatprep.mubr.bf16.mxu0 %v3268_v56  ;;  %3039 = vmatpush3.msra.mxu1 %v1846_v20  ;;  %v1835_v56 = vld [vmem:[%s4486_s3 + $0x8] sm:$0xff] }
  0xac   :  { %3005 = vmatmul.mubr.msk.bf16.gmra.mxu1 %vm1109_vm0, %v3272_v57  ;;  %3040 = vmatprep.subr.mxu1 %v1845_v22 }
  0xad   :  { %3008 = vmatprep.mubr.msk.bf16.mxu1 %vm1109_vm0, %v3279_v58  ;;  %3041 = vmatpush3.msra.mxu1 %v1845_v22 }
  0xae   :  { %3042 = vmatprep.subr.mxu1 %v1844_v23 }
  0xaf   :  { %3043 = vmatpush3.msra.mxu1 %v1844_v23 }
  0xb0   :  { %3044 = vmatprep.subr.mxu1 %v1843_v24 }
  0xb1   :  { %3045 = vmatpush3.msra.mxu1 %v1843_v24 }
  0xb2   :  { %1529 = vmatmul.mubr.bf16.gmra.mxu0 %v3270_v59  ;;  %3046 = vmatprep.subr.mxu1 %v1842_v27  ;;  %v3302_v59 = vld [vmem:[%s4483_s0 + $0x240] ss:$28 sps:$4 sm:$0xff]  }
  0xb3   :  { %1536 = vmatprep.mubr.bf16.mxu0 %v3273_v60  ;;  %3047 = vmatpush3.msra.mxu1 %v1842_v27 }
  0xb4   :  { %3009 = vmatmul.mubr.msk.bf16.gmra.mxu1 %vm1109_vm0, %v3280_v61  ;;  %3048 = vmatprep.subr.mxu1 %v1841_v28 }
  0xb5   :  { %3012 = vmatprep.mubr.msk.bf16.mxu1 %vm1109_vm0, %v3287_v62  ;;  %3049 = vmatpush3.msra.mxu1 %v1841_v28  ;;  %v3305_v62 = vld [vmem:[%s4483_s0 + $0x27c] ss:$28 sps:$4 sm:$0xff]  }
  0xb6   :  { %3050 = vmatprep.subr.mxu1 %v1840_v30 }
  0xb7   :  { %3051 = vmatpush3.msra.mxu1 %v1840_v30 }
  0xb8   :  { %3052 = vmatprep.subr.mxu1 %v1839_v35 }
  0xb9   :  { %3053 = vmatpush3.msra.mxu1 %v1839_v35 }
  0xba   :  { %1537 = vmatmul.mubr.bf16.gmra.mxu0 %v3275_v63  ;;  %3054 = vmatprep.subr.mxu1 %v1838_v38  ;;  %v1834_v63 = vld [vmem:[%s4486_s3] sm:$0xff] }
  0xbb   :  { %1544 = vmatprep.mubr.bf16.mxu0 %v3276_v0  ;;  %3055 = vmatpush3.msra.mxu1 %v1838_v38 }
  0xbc   :  { %3013 = vmatmul.mubr.msk.bf16.gmra.mxu1 %vm1109_vm0, %v3288_v1  ;;  %3056 = vmatprep.subr.mxu1 %v1837_v46 }
  0xbd   :  { %3016 = vmatprep.mubr.msk.bf16.mxu1 %vm1109_vm0, %v3295_v2  ;;  %3057 = vmatpush3.msra.mxu1 %v1837_v46 }
  0xbe   :  { %3058 = vmatprep.subr.mxu1 %v1836_v51 }
  0xbf   :  { %3059 = vmatpush3.msra.mxu1 %v1836_v51 }
  0xc0   :  { %3060 = vmatprep.subr.mxu1 %v1835_v56 }
  0xc1   :  { %3061 = vmatpush3.msra.mxu1 %v1835_v56 }
  0xc2   :  { %1545 = vmatmul.mubr.bf16.gmra.mxu0 %v3278_v3  ;;  %3062 = vmatprep.subr.mxu1 %v1834_v63 }
  0xc3   :  { %1552 = vmatprep.mubr.bf16.mxu0 %v3281_v4  ;;  %3063 = vmatpush3.msra.mxu1 %v1834_v63 }
  0xc4   :  { %3017 = vmatmul.mubr.msk.bf16.gmra.mxu1 %vm1109_vm0, %v3296_v5 }
  0xc5   :  { %3020 = vmatprep.mubr.msk.bf16.mxu1 %vm1109_vm0, %v3303_v6 }
  0xca   :  { %1553 = vmatmul.mubr.bf16.gmra.mxu0 %v3283_v7 }
  0xcb   :  { %1560 = vmatprep.mubr.bf16.mxu0 %v3284_v8 }
  0xcc   :  { %3021 = vmatmul.mubr.msk.bf16.gmra.mxu1 %vm1109_vm0, %v3304_v9 }
  0xcd   :  { %3024 = vmatprep.mubr.msk.bf16.mxu1 %vm1109_vm0, %v3311_v10 }
  0xd2   :  { %1561 = vmatmul.mubr.bf16.gmra.mxu0 %v3286_v11 }
  0xd3   :  { %1568 = vmatprep.mubr.bf16.mxu0 %v3289_v12 }
  0xd4   :  { %3025 = vmatmul.mubr.msk.bf16.gmra.mxu1 %vm1109_vm0, %v3312_v13 }
  0xd5   :  { %3028 = vmatprep.mubr.msk.bf16.mxu1 %vm1109_vm0, %v3319_v15 }
  0xda   :  { %1569 = vmatmul.mubr.bf16.gmra.mxu0 %v3291_v18 }
  0xdb   :  { %1576 = vmatprep.mubr.bf16.mxu0 %v3292_v19 }
  0xdc   :  { %3029 = vmatmul.mubr.msk.bf16.gmra.mxu1 %vm1109_vm0, %v3320_v21 }
  0xe2   :  { %v2613_v29 = vpop.f32.mrf.mxu0  ;;  %1577 = vmatmul.mubr.bf16.gmra.mxu0 %v3294_v25 }
  0xe3   :  { %1584 = vmatprep.mubr.bf16.mxu0 %v3297_v26 }
  0xe4   :  { %v2614_v32 = vpop.f32.mrf.mxu0  ;;  %v2725_v34 = vpop.f32.mrf.mxu1 }
  0xe5   :  { %v2615_v33 = vadd.f32 %v2614_v32, %v2613_v29 }
  0xe6   :  { %v2616_v36 = vpop.f32.mrf.mxu0  ;;  %v2726_v40 = vpop.f32.mrf.mxu1 }
  0xe7   :  { %v1193_v39 = vadd.f32 %v2615_v33, %v4000_v31  ;;  %v2727_v42 = vadd.f32 %v2726_v40, %v2725_v34  ;;  %v3308_v33 = vld [vmem:[%s4483_s0 + $0x2b0] ss:$28 sps:$4 sm:$0xff]  }
  0xe8   :  { %v2617_v43 = vpop.f32.mrf.mxu0  ;;  %v2728_v45 = vpop.f32.mrf.mxu1 }
  0xe9   :  { %v2618_v44 = vadd.f32 %v2617_v43, %v2616_v36  ;;  %v4018_v47 = vadd.f32 %v2727_v42, %v1193_v39  ;;  %v3315_v36 = vld [vmem:[%s4483_s0 + $0x2ec] ss:$28 sps:$4 sm:$0xff]  }
  0xea   :  { %v2619_v48 = vpop.f32.mrf.mxu0  ;;  %1585 = vmatmul.mubr.bf16.gmra.mxu0 %v3299_v37  ;;  %v2729_v50 = vpop.f32.mrf.mxu1 }
  0xeb   :  { %v1196_v49 = vadd.f32 %v2618_v44, %v4000_v31  ;;  %1592 = vmatprep.mubr.bf16.mxu0 %v3300_v41  ;;  %v2730_v52 = vadd.f32 %v2729_v50, %v2728_v45 }
  0xec   :  { %v2620_v53 = vpop.f32.mrf.mxu0  ;;  %v2731_v55 = vpop.f32.mrf.mxu1 }
  0xed   :  { %v2621_v54 = vadd.f32 %v2620_v53, %v2619_v48  ;;  %v4027_v57 = vadd.f32 %v2730_v52, %v1196_v49  ;;  %v3313_v52 = vld [vmem:[%s4483_s0 + $0x2e8] ss:$28 sps:$4 sm:$0xff]  }
  0xee   :  { %v2622_v58 = vpop.f32.mrf.mxu0  ;;  %v2732_v61 = vpop.f32.mrf.mxu1 }
  0xef   :  { %v1201_v60 = vadd.f32 %v2621_v54, %v4000_v31  ;;  %v2733_v0 = vadd.f32 %v2732_v61, %v2731_v55  ;;  %v3318_v55 = vld [vmem:[%s4483_s0 + $0x324] ss:$28 sps:$4 sm:$0xff]  }
  0xf0   :  { %v2623_v1 = vpop.f32.mrf.mxu0  ;;  %v2734_v3 = vpop.f32.mrf.mxu1 }
  0xf1   :  { %v2624_v2 = vadd.f32 %v2623_v1, %v2622_v58  ;;  %v4039_v4 = vadd.f32 %v2733_v0, %v1201_v60 }
  0xf2   :  { %v2625_v5 = vpop.f32.mrf.mxu0  ;;  %1593 = vmatmul.mubr.bf16.gmra.mxu0 %v3302_v59  ;;  %v2735_v7 = vpop.f32.mrf.mxu1 }
  0xf3   :  { %v1204_v6 = vadd.f32 %v2624_v2, %v4000_v31  ;;  %1600 = vmatprep.mubr.bf16.mxu0 %v3305_v62  ;;  %v2736_v8 = vadd.f32 %v2735_v7, %v2734_v3 }
  0xf4   :  { %v2626_v9 = vpop.f32.mrf.mxu0  ;;  %v2737_v11 = vpop.f32.mrf.mxu1 }
  0xf5   :  { %v2627_v10 = vadd.f32 %v2626_v9, %v2625_v5  ;;  %v4042_v12 = vadd.f32 %v2736_v8, %v1204_v6  ;;  %v3316_v8 = vld [vmem:[%s4483_s0 + $0x320] ss:$28 sps:$4 sm:$0xff]  }
  0xf6   :  { %v2628_v13 = vpop.f32.mrf.mxu0  ;;  %v2738_v16 = vpop.f32.mrf.mxu1 }
  0xf7   :  { %v1209_v15 = vadd.f32 %v2627_v10, %v4000_v31  ;;  %v2739_v18 = vadd.f32 %v2738_v16, %v2737_v11  ;;  %v3323_v11 = vld [vmem:[%s4483_s0 + $0x35c] ss:$28 sps:$4 sm:$0xff]  }
  0xf8   :  { %v2629_v19 = vpop.f32.mrf.mxu0  ;;  %v2740_v21 = vpop.f32.mrf.mxu1 }
  0xf9   :  { %v2630_v20 = vadd.f32 %v2629_v19, %v2628_v13  ;;  %v4051_v22 = vadd.f32 %v2739_v18, %v1209_v15 }
  0xfa   :  { %v2631_v23 = vpop.f32.mrf.mxu0  ;;  %1601 = vmatmul.mubr.bf16.gmra.mxu0 %v3307_v14  ;;  %v2741_v25 = vpop.f32.mrf.mxu1 }
  0xfb   :  { %v1212_v24 = vadd.f32 %v2630_v20, %v4000_v31  ;;  %1608 = vmatprep.mubr.bf16.mxu0 %v3310_v17  ;;  %v2742_v26 = vadd.f32 %v2741_v25, %v2740_v21 }
  0xfc   :  { %v2632_v27 = vpop.f32.mrf.mxu0  ;;  %v2743_v29 = vpop.f32.mrf.mxu1 }
  0xfd   :  { %v2633_v28 = vadd.f32 %v2632_v27, %v2631_v23  ;;  %v4054_v30 = vadd.f32 %v2742_v26, %v1212_v24 }
  0xfe   :  { %v2634_v32 = vpop.f32.mrf.mxu0  ;;  %v2744_v35 = vpop.f32.mrf.mxu1 }
  0xff   :  { %v1217_v34 = vadd.f32 %v2633_v28, %v4000_v31  ;;  %v2745_v37 = vadd.f32 %v2744_v35, %v2743_v29  ;;  %v3321_v28 = vld [vmem:[%s4483_s0 + $0x358] ss:$28 sps:$4 sm:$0xff]  }
 0x100   :  { %v2635_v38 = vpop.f32.mrf.mxu0  ;;  %v2746_v40 = vpop.f32.mrf.mxu1 }
 0x101   :  { %v2636_v39 = vadd.f32 %v2635_v38, %v2634_v32  ;;  %v4063_v41 = vadd.f32 %v2745_v37, %v1217_v34 }
 0x102   :  { %v2637_v42 = vpop.f32.mrf.mxu0  ;;  %1609 = vmatmul.mubr.bf16.gmra.mxu0 %v3308_v33  ;;  %v2747_v44 = vpop.f32.mrf.mxu1 }
 0x103   :  { %v1220_v43 = vadd.f32 %v2636_v39, %v4000_v31  ;;  %1616 = vmatprep.mubr.bf16.mxu0 %v3315_v36  ;;  %v2748_v45 = vadd.f32 %v2747_v44, %v2746_v40 }
 0x104   :  { %v2638_v46 = vpop.f32.mrf.mxu0  ;;  %v2749_v49 = vpop.f32.mrf.mxu1 }
 0x105   :  { %v2639_v48 = vadd.f32 %v2638_v46, %v2637_v42  ;;  %v4066_v50 = vadd.f32 %v2748_v45, %v1220_v43 }
 0x106   :  { %v2640_v51 = vpop.f32.mrf.mxu0  ;;  %v2750_v54 = vpop.f32.mrf.mxu1 }
 0x107   :  { %v1225_v53 = vadd.f32 %v2639_v48, %v4000_v31  ;;  %v2751_v56 = vadd.f32 %v2750_v54, %v2749_v49 }
 0x108   :  { %v2641_v58 = vpop.f32.mrf.mxu0  ;;  %v2752_v60 = vpop.f32.mrf.mxu1 }
 0x109   :  { %v2642_v59 = vadd.f32 %v2641_v58, %v2640_v51  ;;  %v4075_v61 = vadd.f32 %v2751_v56, %v1225_v53 }
 0x10a   :  { %v2643_v62 = vpop.f32.mrf.mxu0  ;;  %1617 = vmatmul.mubr.bf16.gmra.mxu0 %v3313_v52  ;;  %v2753_v0 = vpop.f32.mrf.mxu1 }
 0x10b   :  { %v1228_v63 = vadd.f32 %v2642_v59, %v4000_v31  ;;  %1624 = vmatprep.mubr.bf16.mxu0 %v3318_v55  ;;  %v2754_v1 = vadd.f32 %v2753_v0, %v2752_v60 }
 0x10c   :  { %v2644_v2 = vpop.f32.mrf.mxu0  ;;  %v2755_v5 = vpop.f32.mrf.mxu1 }
 0x10d   :  { %v2645_v3 = vadd.f32 %v2644_v2, %v2643_v62  ;;  %v4078_v6 = vadd.f32 %v2754_v1, %v1228_v63 }
 0x10e   :  { %v2646_v7 = vpop.f32.mrf.mxu0  ;;  %v2756_v10 = vpop.f32.mrf.mxu1 }
 0x10f   :  { %v1233_v9 = vadd.f32 %v2645_v3, %v4000_v31  ;;  %v2757_v13 = vadd.f32 %v2756_v10, %v2755_v5 }
 0x110   :  { %v2647_v14 = vpop.f32.mrf.mxu0  ;;  %v2758_v16 = vpop.f32.mrf.mxu1 }
 0x111   :  { %v2648_v15 = vadd.f32 %v2647_v14, %v2646_v7  ;;  %v4087_v17 = vadd.f32 %v2757_v13, %v1233_v9 }
 0x112   :  { %v2649_v18 = vpop.f32.mrf.mxu0  ;;  %1625 = vmatmul.mubr.bf16.gmra.mxu0 %v3316_v8  ;;  %v2759_v20 = vpop.f32.mrf.mxu1 }
 0x113   :  { %v1236_v19 = vadd.f32 %v2648_v15, %v4000_v31  ;;  %1632 = vmatprep.mubr.bf16.mxu0 %v3323_v11  ;;  %v2760_v21 = vadd.f32 %v2759_v20, %v2758_v16 }
 0x114   :  { %v2650_v23 = vpop.f32.mrf.mxu0  ;;  %v2761_v25 = vpop.f32.mrf.mxu1 }
 0x115   :  { %v2651_v24 = vadd.f32 %v2650_v23, %v2649_v18  ;;  %v4090_v26 = vadd.f32 %v2760_v21, %v1236_v19 }
 0x116   :  { %v2652_v27 = vpop.f32.mrf.mxu0  ;;  %v2762_v32 = vpop.f32.mrf.mxu1 }
 0x117   :  { %v1241_v29 = vadd.f32 %v2651_v24, %v4000_v31  ;;  %v2763_v33 = vadd.f32 %v2762_v32, %v2761_v25 }
 0x118   :  { %v2653_v34 = vpop.f32.mrf.mxu0  ;;  %v2764_v36 = vpop.f32.mrf.mxu1 }
 0x119   :  { %v2654_v35 = vadd.f32 %v2653_v34, %v2652_v27  ;;  %v4096_v37 = vadd.f32 %v2763_v33, %v1241_v29 }
 0x11a   :  { %v2655_v38 = vpop.f32.mrf.mxu0  ;;  %1633 = vmatmul.mubr.bf16.gmra.mxu0 %v3321_v28  ;;  %v2765_v40 = vpop.f32.mrf.mxu1 }
 0x11b   :  { %v1244_v39 = vadd.f32 %v2654_v35, %v4000_v31  ;;  %v2766_v42 = vadd.f32 %v2765_v40, %v2764_v36 }
 0x11c   :  { %v2656_v43 = vpop.f32.mrf.mxu0  ;;  %v2767_v45 = vpop.f32.mrf.mxu1 }
 0x11d   :  { %v2657_v44 = vadd.f32 %v2656_v43, %v2655_v38  ;;  %v4099_v46 = vadd.f32 %v2766_v42, %v1244_v39 }
 0x11e   :  { %v2658_v48 = vpop.f32.mrf.mxu0  ;;  %v2768_v51 = vpop.f32.mrf.mxu1 }
 0x11f   :  { %v1249_v49 = vadd.f32 %v2657_v44, %v4000_v31  ;;  %v2769_v52 = vadd.f32 %v2768_v51, %v2767_v45 }
 0x120   :  { %v2659_v53 = vpop.f32.mrf.mxu0  ;;  %v2770_v55 = vpop.f32.mrf.mxu1 }
 0x121   :  { %v2660_v54 = vadd.f32 %v2659_v53, %v2658_v48  ;;  %v4102_v56 = vadd.f32 %v2769_v52, %v1249_v49 }
 0x122   :  { %v2661_v58 = vpop.f32.mrf.mxu0  ;;  %v2771_v60 = vpop.f32.mrf.mxu1 }
 0x123   :  { %v1252_v59 = vadd.f32 %v2660_v54, %v4000_v31  ;;  %v2772_v62 = vadd.f32 %v2771_v60, %v2770_v55 }
 0x124   :  { %v2662_v63 = vpop.f32.mrf.mxu0  ;;  %v2773_v1 = vpop.f32.mrf.mxu1 }
 0x125   :  { %v2663_v0 = vadd.f32 %v2662_v63, %v2661_v58  ;;  %v4105_v2 = vadd.f32 %v2772_v62, %v1252_v59 }
 0x126   :  { %v2664_v3 = vpop.f32.mrf.mxu0  ;;  %v2774_v7 = vpop.f32.mrf.mxu1 }
 0x127   :  { %v1257_v5 = vadd.f32 %v2663_v0, %v4000_v31  ;;  %v2775_v8 = vadd.f32 %v2774_v7, %v2773_v1 }
 0x128   :  { %v2665_v9 = vpop.f32.mrf.mxu0  ;;  %v2776_v11 = vpop.f32.mrf.mxu1 }
 0x129   :  { %v2666_v10 = vadd.f32 %v2665_v9, %v2664_v3  ;;  %v4108_v13 = vadd.f32 %v2775_v8, %v1257_v5 }
 0x12a   :  { %v2667_v14 = vpop.f32.mrf.mxu0  ;;  %v2777_v16 = vpop.f32.mrf.mxu1 }
 0x12b   :  { %v1260_v15 = vadd.f32 %v2666_v10, %v4000_v31  ;;  %v2778_v18 = vadd.f32 %v2777_v16, %v2776_v11 }
 0x12c   :  { %v2668_v19 = vpop.f32.mrf.mxu0  ;;  %v2779_v21 = vpop.f32.mrf.mxu1 }
 0x12d   :  { %v2669_v20 = vadd.f32 %v2668_v19, %v2667_v14  ;;  %v4111_v23 = vadd.f32 %v2778_v18, %v1260_v15 }
 0x12e   :  { %v2670_v24 = vpop.f32.mrf.mxu0  ;;  %v2780_v27 = vpop.f32.mrf.mxu1 }
 0x12f   :  { %v1265_v25 = vadd.f32 %v2669_v20, %v4000_v31  ;;  %v2781_v28 = vadd.f32 %v2780_v27, %v2779_v21 }
 0x130   :  { %v2671_v29 = vpop.f32.mrf.mxu0  ;;  %v2782_v33 = vpop.f32.mrf.mxu1 }
 0x131   :  { %v2672_v32 = vadd.f32 %v2671_v29, %v2670_v24  ;;  %v4114_v34 = vadd.f32 %v2781_v28, %v1265_v25 }
 0x132   :  { %v2673_v35 = vpop.f32.mrf.mxu0  ;;  %v2783_v38 = vpop.f32.mrf.mxu1 }
 0x133   :  { %v1268_v36 = vadd.f32 %v2672_v32, %v4000_v31  ;;  %v2784_v39 = vadd.f32 %v2783_v38, %v2782_v33 }
 0x134   :  { %v2674_v40 = vpop.f32.mrf.mxu0  ;;  %v2785_v43 = vpop.f32.mrf.mxu1 }
 0x135   :  { %v2675_v42 = vadd.f32 %v2674_v40, %v2673_v35  ;;  %v4117_v44 = vadd.f32 %v2784_v39, %v1268_v36 }
 0x136   :  { %v2676_v45 = vpop.f32.mrf.mxu0  ;;  %v2786_v49 = vpop.f32.mrf.mxu1 }
 0x137   :  { %v1273_v48 = vadd.f32 %v2675_v42, %v4000_v31  ;;  %v2787_v51 = vadd.f32 %v2786_v49, %v2785_v43 }
 0x138   :  { %v2677_v52 = vpop.f32.mrf.mxu0  ;;  %v2788_v54 = vpop.f32.mrf.mxu1 }
 0x139   :  { %v2678_v53 = vadd.f32 %v2677_v52, %v2676_v45  ;;  %v4120_v55 = vadd.f32 %v2787_v51, %v1273_v48 }
 0x13a   :  { %v2679_v58 = vpop.f32.mrf.mxu0  ;;  %v2789_v60 = vpop.f32.mrf.mxu1 }
 0x13b   :  { %v1276_v59 = vadd.f32 %v2678_v53, %v4000_v31  ;;  %v2790_v62 = vadd.f32 %v2789_v60, %v2788_v54 }
 0x13c   :  { %v2680_v63 = vpop.f32.mrf.mxu0  ;;  %v2791_v1 = vpop.f32.mrf.mxu1 }
 0x13d   :  { %v2681_v0 = vadd.f32 %v2680_v63, %v2679_v58  ;;  %v4123_v3 = vadd.f32 %v2790_v62, %v1276_v59 }
 0x13e   :  { %v2682_v5 = vpop.f32.mrf.mxu0  ;;  %v2792_v8 = vpop.f32.mrf.mxu1 }
 0x13f   :  { %v1281_v7 = vadd.f32 %v2681_v0, %v4000_v31  ;;  %v2793_v9 = vadd.f32 %v2792_v8, %v2791_v1 }
 0x140   :  { %v2683_v10 = vpop.f32.mrf.mxu0  ;;  %v2794_v14 = vpop.f32.mrf.mxu1 }
 0x141   :  { %v2684_v11 = vadd.f32 %v2683_v10, %v2682_v5  ;;  %v4126_v15 = vadd.f32 %v2793_v9, %v1281_v7 }
 0x142   :  { %v2685_v16 = vpop.f32.mrf.mxu0  ;;  %v2795_v19 = vpop.f32.mrf.mxu1 }
 0x143   :  { %v1284_v18 = vadd.f32 %v2684_v11, %v4000_v31  ;;  %v2796_v20 = vadd.f32 %v2795_v19, %v2794_v14 }
 0x144   :  { %v2686_v21 = vpop.f32.mrf.mxu0  ;;  %v2797_v25 = vpop.f32.mrf.mxu1 }
 0x145   :  { %v2687_v24 = vadd.f32 %v2686_v21, %v2685_v16  ;;  %v4129_v27 = vadd.f32 %v2796_v20, %v1284_v18 }
 0x146   :  { %v2688_v28 = vpop.f32.mrf.mxu0  ;;  %v2798_v32 = vpop.f32.mrf.mxu1 }
 0x147   :  { %v1289_v29 = vadd.f32 %v2687_v24, %v4000_v31  ;;  %v2799_v33 = vadd.f32 %v2798_v32, %v2797_v25 }
 0x148   :  { %v2689_v35 = vpop.f32.mrf.mxu0  ;;  %v2800_v38 = vpop.f32.mrf.mxu1 }
 0x149   :  { %v2690_v36 = vadd.f32 %v2689_v35, %v2688_v28  ;;  %v4132_v39 = vadd.f32 %v2799_v33, %v1289_v29 }
 0x14a   :  { %v2691_v40 = vpop.f32.mrf.mxu0  ;;  %v2801_v43 = vpop.f32.mrf.mxu1 }
 0x14b   :  { %v1292_v42 = vadd.f32 %v2690_v36, %v4000_v31  ;;  %v2802_v45 = vadd.f32 %v2801_v43, %v2800_v38 }
 0x14c   :  { %v2692_v48 = vpop.f32.mrf.mxu0  ;;  %v2803_v51 = vpop.f32.mrf.mxu1 }
 0x14d   :  { %v2693_v49 = vadd.f32 %v2692_v48, %v2691_v40  ;;  %v4135_v52 = vadd.f32 %v2802_v45, %v1292_v42 }
 0x14e   :  { %v2694_v53 = vpop.f32.mrf.mxu0  ;;  %v2804_v58 = vpop.f32.mrf.mxu1 }
 0x14f   :  { %v1297_v54 = vadd.f32 %v2693_v49, %v4000_v31  ;;  %v2805_v59 = vadd.f32 %v2804_v58, %v2803_v51 }
 0x150   :  { %v2695_v60 = vpop.f32.mrf.mxu0  ;;  %v2806_v63 = vpop.f32.mrf.mxu1 }
 0x151   :  { %v2696_v62 = vadd.f32 %v2695_v60, %v2694_v53  ;;  %v4138_v0 = vadd.f32 %v2805_v59, %v1297_v54 }
 0x152   :  { %v2697_v1 = vpop.f32.mrf.mxu0  ;;  %v2807_v7 = vpop.f32.mrf.mxu1 }
 0x153   :  { %v1300_v5 = vadd.f32 %v2696_v62, %v4000_v31  ;;  %v2808_v8 = vadd.f32 %v2807_v7, %v2806_v63 }
 0x154   :  { %v2698_v9 = vpop.f32.mrf.mxu0  ;;  %v2809_v11 = vpop.f32.mrf.mxu1 }
 0x155   :  { %v2699_v10 = vadd.f32 %v2698_v9, %v2697_v1  ;;  %v4141_v14 = vadd.f32 %v2808_v8, %v1300_v5 }
 0x156   :  { %v2700_v16 = vpop.f32.mrf.mxu0  ;;  %v2810_v19 = vpop.f32.mrf.mxu1 }
 0x157   :  { %v1305_v18 = vadd.f32 %v2699_v10, %v4000_v31  ;;  %v2811_v20 = vadd.f32 %v2810_v19, %v2809_v11 }
 0x158   :  { %v2701_v21 = vpop.f32.mrf.mxu0  ;;  %v2812_v25 = vpop.f32.mrf.mxu1 }
 0x159   :  { %v2702_v24 = vadd.f32 %v2701_v21, %v2700_v16  ;;  %v4144_v28 = vadd.f32 %v2811_v20, %v1305_v18 }
 0x15a   :  { %v2703_v29 = vpop.f32.mrf.mxu0  ;;  %v2813_v33 = vpop.f32.mrf.mxu1 }
 0x15b   :  { %v1308_v32 = vadd.f32 %v2702_v24, %v4000_v31  ;;  %v2814_v35 = vadd.f32 %v2813_v33, %v2812_v25 }
 0x15c   :  { %v2704_v36 = vpop.f32.mrf.mxu0  ;;  %v2815_v40 = vpop.f32.mrf.mxu1 }
 0x15d   :  { %v2705_v38 = vadd.f32 %v2704_v36, %v2703_v29  ;;  %v4147_v42 = vadd.f32 %v2814_v35, %v1308_v32 }
 0x15e   :  { %v2706_v43 = vpop.f32.mrf.mxu0  ;;  %v2816_v48 = vpop.f32.mrf.mxu1 }
 0x15f   :  { %v1313_v45 = vadd.f32 %v2705_v38, %v4000_v31  ;;  %v2817_v49 = vadd.f32 %v2816_v48, %v2815_v40 }
 0x160   :  { %v2707_v51 = vpop.f32.mrf.mxu0  ;;  %v2818_v54 = vpop.f32.mrf.mxu1 }
 0x161   :  { %v2708_v53 = vadd.f32 %v2707_v51, %v2706_v43  ;;  %v4150_v58 = vadd.f32 %v2817_v49, %v1313_v45 }
 0x162   :  { %v2837_v59 = vpop.f32.mrf.mxu0  ;;  %v2819_v62 = vpop.f32.mrf.mxu1 }
 0x163   :  { %v1316_v60 = vadd.f32 %v2708_v53, %v4000_v31  ;;  %v2820_v63 = vadd.f32 %v2819_v62, %v2818_v54 }
 0x164   :  { %v2838_v1 = vpop.f32.mrf.mxu0  ;;  %v3002_v7 = vpop.f32.mrf.mxu1 }
 0x165   :  { %v2839_v5 = vadd.f32 %v2838_v1, %v2837_v59  ;;  %v4153_v8 = vadd.f32 %v2820_v63, %v1316_v60 }
 0x166   :  { %v2840_v9 = vpop.f32.mrf.mxu0  ;;  %v1675_v11 = vpop.f32.mrf.mxu1 }
 0x167   :  { %v1515_v10 = vadd.f32 %v2839_v5, %v4018_v47 }
 0x168   :  { %v2841_v16 = vpop.f32.mrf.mxu0  ;;  %v3003_v20 = vpop.f32.mrf.mxu1 }
 0x169   :  { %v2842_v18 = vadd.f32 %v2841_v16, %v2840_v9  ;;  %v1676_v19 = vadd.f32 %v1675_v11, %v1515_v10 }
 0x16a   :  { %v2843_v21 = vpop.f32.mrf.mxu0  ;;  %v1678_v31 = vpop.f32.mrf.mxu1 }
 0x16b   :  { %v1802_v24 = vmax.f32 %v1676_v19, 0.0  ;;  %v1518_v25 = vadd.f32 %v2842_v18, %v4027_v57 }
 0x16c   :  { %v2844_v29 = vpop.f32.mrf.mxu0  ;;  %v3006_v36 = vpop.f32.mrf.mxu1 }
 0x16d   :  { %v2845_v32 = vadd.f32 %v2844_v29, %v2843_v21  ;;  %v1679_v33 = vadd.f32 %v1678_v31, %v1518_v25  ;;  %3064 = vmatprep.mubr.f32.mxu1 %v1802_v24 }
 0x16e   :  { %v2846_v35 = vpop.f32.mrf.mxu0  ;;  %v1691_v49 = vpop.f32.mrf.mxu1 }
 0x16f   :  { %v1523_v38 = vadd.f32 %v2845_v32, %v4039_v4  ;;  %v1803_v40 = vmax.f32 %v1679_v33, 0.0 }
 0x170   :  { %v2847_v47 = vpop.f32.mrf.mxu0  ;;  %v3007_v62 = vpop.f32.mrf.mxu1 }
 0x171   :  { %v2848_v43 = vadd.f32 %v2847_v47, %v2846_v35  ;;  %3065 = vmatmul.mubr.f32.vlgmr.msra.gmra.mxu1 %v1803_v40  ;;  %v1684_v45 = vadd.f32 %v3002_v7, %v1523_v38 }
 0x172   :  { %v2849_v48 = vpop.f32.mrf.mxu0  ;;  %v1694_v7 = vpop.f32.mrf.mxu1 }
 0x173   :  { %v1526_v51 = vadd.f32 %v2848_v43, %v4042_v12  ;;  %v1804_v53 = vmax.f32 %v1684_v45, 0.0 }
 0x174   :  { %v2850_v57 = vpop.f32.mrf.mxu0 }
 0x175   :  { %v2851_v54 = vadd.f32 %v2850_v57, %v2849_v48  ;;  %3067 = vmatprep.mubr.f32.mxu1 %v1804_v53  ;;  %v1687_v59 = vadd.f32 %v3003_v20, %v1526_v51  ;;  %v3010_v20 = vpop.f32.mrf.mxu1 }
 0x176   :  { %v2852_v60 = vpop.f32.mrf.mxu0 }
 0x177   :  { %v1531_v63 = vadd.f32 %v2851_v54, %v4051_v22  ;;  %v1805_v1 = vmax.f32 %v1687_v59, 0.0  ;;  %v1707_v33 = vpop.f32.mrf.mxu1 }
 0x178   :  { %v2853_v4 = vpop.f32.mrf.mxu0 }
 0x179   :  { %v2854_v5 = vadd.f32 %v2853_v4, %v2852_v60  ;;  %v1692_v9 = vadd.f32 %v1691_v49, %v1531_v63  ;;  %3068 = vmatmul.mubr.f32.gmra.mxu1 %v1805_v1  ;;  %v3011_v45 = vpop.f32.mrf.mxu1 }
 0x17a   :  { %v2855_v10 = vpop.f32.mrf.mxu0 }
 0x17b   :  { %v1806_v11 = vmax.f32 %v1692_v9, 0.0  ;;  %v1534_v16 = vadd.f32 %v2854_v5, %v4054_v30 }
 0x17c   :  { %v2856_v12 = vpop.f32.mrf.mxu0 }
 0x17d   :  { %v2857_v18 = vadd.f32 %v2856_v12, %v2855_v10  ;;  %v1695_v19 = vadd.f32 %v1694_v7, %v1534_v16  ;;  %3070 = vmatprep.mubr.f32.mxu1 %v1806_v11 }
 0x17e   :  { %v2858_v21 = vpop.f32.mrf.mxu0 }
 0x17f   :  { %v1539_v24 = vadd.f32 %v2857_v18, %v4063_v41  ;;  %v1807_v25 = vmax.f32 %v1695_v19, 0.0 }
 0x180   :  { %v2859_v22 = vpop.f32.mrf.mxu0 }
 0x181   :  { %v2860_v31 = vadd.f32 %v2859_v22, %v2858_v21  ;;  %3071 = vmatmul.mubr.f32.gmra.mxu1 %v1807_v25  ;;  %v1700_v29 = vadd.f32 %v3006_v36, %v1539_v24  ;;  %v1710_v36 = vpop.f32.mrf.mxu1 }
 0x182   :  { %v2861_v32 = vpop.f32.mrf.mxu0 }
 0x183   :  { %v1542_v35 = vadd.f32 %v2860_v31, %v4066_v50  ;;  %v1808_v38 = vmax.f32 %v1700_v29, 0.0 }
 0x184   :  { %v2862_v40 = vpop.f32.mrf.mxu0 }
 0x185   :  { %v2863_v30 = vadd.f32 %v2862_v40, %v2861_v32  ;;  %3073 = vmatprep.mubr.f32.mxu1 %v1808_v38  ;;  %v1703_v47 = vadd.f32 %v3007_v62, %v1542_v35  ;;  %v3014_v62 = vpop.f32.mrf.mxu1 }
 0x186   :  { %v2864_v43 = vpop.f32.mrf.mxu0 }
 0x187   :  { %v1547_v48 = vadd.f32 %v2863_v30, %v4075_v61  ;;  %v1809_v49 = vmax.f32 %v1703_v47, 0.0  ;;  %v1723_v11 = vpop.f32.mrf.mxu1 }
 0x188   :  { %v2865_v41 = vpop.f32.mrf.mxu0 }
 0x189   :  { %v2866_v51 = vadd.f32 %v2865_v41, %v2864_v43  ;;  %v1708_v53 = vadd.f32 %v1707_v33, %v1547_v48  ;;  %3074 = vmatmul.mubr.f32.gmra.mxu1 %v1809_v49  ;;  %v3015_v24 = vpop.f32.mrf.mxu1 }
 0x18a   :  { %v2867_v57 = vpop.f32.mrf.mxu0 }
 0x18b   :  { %v1810_v54 = vmax.f32 %v1708_v53, 0.0  ;;  %v1550_v59 = vadd.f32 %v2866_v51, %v4078_v6 }
 0x18c   :  { %v2868_v50 = vpop.f32.mrf.mxu0 }
 0x18d   :  { %v2869_v60 = vadd.f32 %v2868_v50, %v2867_v57  ;;  %v1711_v63 = vadd.f32 %v1710_v36, %v1550_v59  ;;  %3076 = vmatprep.mubr.f32.mxu1 %v1810_v54 }
 0x18e   :  { %v2870_v1 = vpop.f32.mrf.mxu0 }
 0x18f   :  { %v1555_v4 = vadd.f32 %v2869_v60, %v4087_v17  ;;  %v1811_v5 = vmax.f32 %v1711_v63, 0.0 }
 0x190   :  { %v2871_v61 = vpop.f32.mrf.mxu0 }
 0x191   :  { %v2872_v9 = vadd.f32 %v2871_v61, %v2870_v1  ;;  %3077 = vmatmul.mubr.f32.gmra.mxu1 %v1811_v5  ;;  %v1716_v10 = vadd.f32 %v3010_v20, %v1555_v4  ;;  %v1726_v20 = vpop.f32.mrf.mxu1 }
 0x192   :  { %v2873_v7 = vpop.f32.mrf.mxu0 }
 0x193   :  { %v1558_v16 = vadd.f32 %v2872_v9, %v4090_v26  ;;  %v1812_v12 = vmax.f32 %v1716_v10, 0.0  ;;  %v3018_v47 = vpop.f32.mrf.mxu1 }
 0x194   :  { %v2874_v18 = vpop.f32.mrf.mxu0 }
 0x195   :  { %v2875_v6 = vadd.f32 %v2874_v18, %v2873_v7  ;;  %3079 = vmatprep.mubr.f32.mxu1 %v1812_v12  ;;  %v1719_v19 = vadd.f32 %v3011_v45, %v1558_v16  ;;  %v1739_v51 = vpop.f32.mrf.mxu1 }
 0x196   :  { %v2876_v21 = vpop.f32.mrf.mxu0 }
 0x197   :  { %v1563_v25 = vadd.f32 %v2875_v6, %v4096_v37  ;;  %v1813_v22 = vmax.f32 %v1719_v19, 0.0  ;;  %v3019_v50 = vpop.f32.mrf.mxu1 }
 0x198   :  { %v2877_v17 = vpop.f32.mrf.mxu0 }
 0x199   :  { %v2878_v31 = vadd.f32 %v2877_v17, %v2876_v21  ;;  %v1724_v29 = vadd.f32 %v1723_v11, %v1563_v25  ;;  %3080 = vmatmul.mubr.f32.gmra.mxu1 %v1813_v22 }
 0x19a   :  { %v2879_v32 = vpop.f32.mrf.mxu0 }
 0x19b   :  { %v1814_v33 = vmax.f32 %v1724_v29, 0.0  ;;  %v1566_v35 = vadd.f32 %v2878_v31, %v4099_v46 }
 0x19c   :  { %v2880_v26 = vpop.f32.mrf.mxu0 }
 0x19d   :  { %v2881_v38 = vadd.f32 %v2880_v26, %v2879_v32  ;;  %v1727_v40 = vadd.f32 %v1726_v20, %v1566_v35  ;;  %3082 = vmatprep.mubr.f32.mxu1 %v1814_v33 }
 0x19e   :  { %v2882_v30 = vpop.f32.mrf.mxu0 }
 0x19f   :  { %v1571_v43 = vadd.f32 %v2881_v38, %v4102_v56  ;;  %v1815_v45 = vmax.f32 %v1727_v40, 0.0 }
 0x1a0   :  { %v2883_v37 = vpop.f32.mrf.mxu0 }
 0x1a1   :  { %v2884_v48 = vadd.f32 %v2883_v37, %v2882_v30  ;;  %3083 = vmatmul.mubr.f32.gmra.mxu1 %v1815_v45  ;;  %v1732_v49 = vadd.f32 %v3014_v62, %v1571_v43  ;;  %v1742_v62 = vpop.f32.mrf.mxu1 }
 0x1a2   :  { %v2885_v41 = vpop.f32.mrf.mxu0 }
 0x1a3   :  { %v1574_v53 = vadd.f32 %v2884_v48, %v4105_v2  ;;  %v1816_v57 = vmax.f32 %v1732_v49, 0.0  ;;  %v3022_v16 = vpop.f32.mrf.mxu1 }
 0x1a4   :  { %v2886_v36 = vpop.f32.mrf.mxu0 }
 0x1a5   :  { %v2887_v46 = vadd.f32 %v2886_v36, %v2885_v41  ;;  %3085 = vmatprep.mubr.f32.mxu1 %v1816_v57  ;;  %v1735_v54 = vadd.f32 %v3015_v24, %v1574_v53  ;;  %v1755_v24 = vpop.f32.mrf.mxu1 }
 0x1a6   :  { %v2888_v59 = vpop.f32.mrf.mxu0 }
 0x1a7   :  { %v1579_v60 = vadd.f32 %v2887_v46, %v4108_v13  ;;  %v1817_v63 = vmax.f32 %v1735_v54, 0.0  ;;  %v3023_v32 = vpop.f32.mrf.mxu1 }
 0x1a8   :  { %v2889_v56 = vpop.f32.mrf.mxu0 }
 0x1a9   :  { %v2890_v1 = vadd.f32 %v2889_v56, %v2888_v59  ;;  %v1740_v4 = vadd.f32 %v1739_v51, %v1579_v60  ;;  %3086 = vmatmul.mubr.f32.gmra.mxu1 %v1817_v63  ;;  %v1758_v40 = vpop.f32.mrf.mxu1 }
 0x1aa   :  { %v2891_v5 = vpop.f32.mrf.mxu0 }
 0x1ab   :  { %v1818_v61 = vmax.f32 %v1740_v4, 0.0  ;;  %v1582_v9 = vadd.f32 %v2890_v1, %v4111_v23  ;;  %v3026_v48 = vpop.f32.mrf.mxu1 }
 0x1ac   :  { %v2892_v2 = vpop.f32.mrf.mxu0 }
 0x1ad   :  { %v2893_v10 = vadd.f32 %v2892_v2, %v2891_v5  ;;  %v1743_v7 = vadd.f32 %v1742_v62, %v1582_v9  ;;  %3088 = vmatprep.mubr.f32.mxu1 %v1818_v61  ;;  %v1771_v36 = vpop.f32.mrf.mxu1 }
 0x1ae   :  { %v2894_v11 = vpop.f32.mrf.mxu0 }
 0x1af   :  { %v1587_v12 = vadd.f32 %v2893_v10, %v4114_v34  ;;  %v1819_v18 = vmax.f32 %v1743_v7, 0.0  ;;  %v3027_v63 = vpop.f32.mrf.mxu1 }
 0x1b0   :  { %v2895_v13 = vpop.f32.mrf.mxu0 }
 0x1b1   :  { %v2896_v6 = vadd.f32 %v2895_v13, %v2894_v11  ;;  %3089 = vmatmul.mubr.f32.gmra.mxu1 %v1819_v18  ;;  %v1748_v19 = vadd.f32 %v3018_v47, %v1587_v12  ;;  %v1774_v61 = vpop.f32.mrf.mxu1 }
 0x1b2   :  { %v2897_v21 = vpop.f32.mrf.mxu0 }
 0x1b3   :  { %v1590_v25 = vadd.f32 %v2896_v6, %v4117_v44  ;;  %v1820_v22 = vmax.f32 %v1748_v19, 0.0  ;;  %v3030_v13 = vpop.f32.mrf.mxu1 }
 0x1b4   :  { %v2898_v17 = vpop.f32.mrf.mxu0 }
 0x1b5   :  { %v1751_v23 = vadd.f32 %v3019_v50, %v1590_v25  ;;  %v2899_v31 = vadd.f32 %v2898_v17, %v2897_v21  ;;  %3091 = vmatprep.mubr.f32.mxu1 %v1820_v22  ;;  %v1787_v22 = vpop.f32.mrf.mxu1 }
 0x1b6   :  { %v2900_v29 = vpop.f32.mrf.mxu0 }
 0x1b7   :  { %v1821_v20 = vmax.f32 %v1751_v23, 0.0  ;;  %v1595_v33 = vadd.f32 %v2899_v31, %v4120_v55 }
 0x1b8   :  { %v2901_v34 = vpop.f32.mrf.mxu0 }
 0x1b9   :  { %v2902_v35 = vadd.f32 %v2901_v34, %v2900_v29  ;;  %v1756_v26 = vadd.f32 %v1755_v24, %v1595_v33  ;;  %3092 = vmatmul.mubr.f32.gmra.mxu1 %v1821_v20 }
 0x1ba   :  { %v2903_v38 = vpop.f32.mrf.mxu0 }
 0x1bb   :  { %v1822_v30 = vmax.f32 %v1756_v26, 0.0  ;;  %v1598_v47 = vadd.f32 %v2902_v35, %v4123_v3 }
 0x1bc   :  { %v2904_v44 = vpop.f32.mrf.mxu0 }
 0x1bd   :  { %v2905_v43 = vadd.f32 %v2904_v44, %v2903_v38  ;;  %v1759_v45 = vadd.f32 %v1758_v40, %v1598_v47  ;;  %3094 = vmatprep.mubr.f32.mxu1 %v1822_v30 }
 0x1be   :  { %v2906_v37 = vpop.f32.mrf.mxu0 }
 0x1bf   :  { %v1603_v49 = vadd.f32 %v2905_v43, %v4126_v15  ;;  %v1823_v41 = vmax.f32 %v1759_v45, 0.0 }
 0x1c0   :  { %v2907_v51 = vpop.f32.mrf.mxu0 }
 0x1c1   :  { %v2908_v55 = vadd.f32 %v2907_v51, %v2906_v37  ;;  %3095 = vmatmul.mubr.f32.gmra.mxu1 %v1823_v41  ;;  %v1764_v53 = vadd.f32 %v3022_v16, %v1603_v49 }
 0x1c2   :  { %v2909_v57 = vpop.f32.mrf.mxu0 }
 0x1c3   :  { %v1606_v46 = vadd.f32 %v2908_v55, %v4129_v27  ;;  %v1824_v54 = vmax.f32 %v1764_v53, 0.0 }
 0x1c4   :  { %v2910_v59 = vpop.f32.mrf.mxu0 }
 0x1c5   :  { %v1767_v3 = vadd.f32 %v3023_v32, %v1606_v46  ;;  %v2911_v50 = vadd.f32 %v2910_v59, %v2909_v57  ;;  %3097 = vmatprep.mubr.f32.mxu1 %v1824_v54  ;;  %v3031_v32 = vpop.f32.mrf.mxu1 }
 0x1c6   :  { %v2912_v60 = vpop.f32.mrf.mxu0 }
 0x1c7   :  { %v1825_v56 = vmax.f32 %v1767_v3, 0.0  ;;  %v1611_v1 = vadd.f32 %v2911_v50, %v4132_v39 }
 0x1c8   :  { %v2913_v15 = vpop.f32.mrf.mxu0 }
 0x1c9   :  { %v2914_v4 = vadd.f32 %v2913_v15, %v2912_v60  ;;  %v1772_v5 = vadd.f32 %v1771_v36, %v1611_v1  ;;  %3098 = vmatmul.mubr.f32.gmra.mxu1 %v1825_v56 }
 0x1ca   :  { %v2915_v62 = vpop.f32.mrf.mxu0 }
 0x1cb   :  { %v1826_v9 = vmax.f32 %v1772_v5, 0.0  ;;  %v1614_v2 = vadd.f32 %v2914_v4, %v4135_v52 }
 0x1cc   :  { %v2916_v27 = vpop.f32.mrf.mxu0 }
 0x1cd   :  { %v2917_v10 = vadd.f32 %v2916_v27, %v2915_v62  ;;  %v1775_v7 = vadd.f32 %v1774_v61, %v1614_v2  ;;  %3100 = vmatprep.mubr.f32.mxu1 %v1826_v9 }
 0x1ce   :  { %v2918_v11 = vpop.f32.mrf.mxu0 }
 0x1cf   :  { %v1619_v16 = vadd.f32 %v2917_v10, %v4138_v0  ;;  %v1827_v12 = vmax.f32 %v1775_v7, 0.0 }
 0x1d0   :  { %v2919_v18 = vpop.f32.mrf.mxu0 }
 0x1d1   :  { %v2920_v39 = vadd.f32 %v2919_v18, %v2918_v11  ;;  %3101 = vmatmul.mubr.f32.gmra.mxu1 %v1827_v12  ;;  %v1780_v6 = vadd.f32 %v3026_v48, %v1619_v16 }
 0x1d2   :  { %v2921_v19 = vpop.f32.mrf.mxu0 }
 0x1d3   :  { %v1622_v21 = vadd.f32 %v2920_v39, %v4141_v14  ;;  %v1828_v24 = vmax.f32 %v1780_v6, 0.0  ;;  %v1790_v14 = vpop.f32.mrf.mxu1 }
 0x1d4   :  { %v2922_v25 = vpop.f32.mrf.mxu0 }
 0x1d5   :  { %v1783_v52 = vadd.f32 %v3027_v63, %v1622_v21  ;;  %v2923_v17 = vadd.f32 %v2922_v25, %v2921_v19  ;;  %3103 = vmatprep.mubr.f32.mxu1 %v1828_v24 }
 0x1d6   :  { %v2924_v23 = vpop.f32.mrf.mxu0 }
 0x1d7   :  { %v1829_v31 = vmax.f32 %v1783_v52, 0.0  ;;  %v1627_v29 = vadd.f32 %v2923_v17, %v4144_v28 }
 0x1d8   :  { %v2925_v0 = vpop.f32.mrf.mxu0 }
 0x1d9   :  { %v1788_v20 = vadd.f32 %v1787_v22, %v1627_v29  ;;  %v2926_v33 = vadd.f32 %v2925_v0, %v2924_v23  ;;  %3104 = vmatmul.mubr.f32.gmra.mxu1 %v1829_v31 }
 0x1da   :  { %v2927_v34 = vpop.f32.mrf.mxu0 }
 0x1db   :  { %v1830_v35 = vmax.f32 %v1788_v20, 0.0  ;;  %v1630_v26 = vadd.f32 %v2926_v33, %v4147_v42  ;;  %v4190_v42 = vld [vmem:[%s4487_s4] ss:$0 sm:$0xff]  ;;  %s3474_s4 = smov [#allocation2]  }
 0x1dc   :  { %v2928_v38 = vpop.f32.mrf.mxu0  ;;  %s2407_s14 = sshll.u32 %s3474_s4, 4  ;;  %s2408_s14 = int_to_ptr.vmem [resolvable:$true] %s2407_s14 }
 0x1dd   :  { %v1791_v40 = vadd.f32 %v1790_v14, %v1630_v26  ;;  %v2929_v30 = vadd.f32 %v2928_v38, %v2927_v34  ;;  %3106 = vmatprep.mubr.f32.mxu1 %v1830_v35  ;;  %s3452_s15 = scalar_lea.vmem %s2408_s14, 4096  ;;  %p3457_p1 = scmp.lt.s32.totalorder %s2408_s14, %s2408_s14 }
 0x1de   :  { %v2930_v47 = vpop.f32.mrf.mxu0  ;;  %p3453_p0 = scmp.ne.s32.totalorder %s2408_s14, %s3452_s15  ;;  %p3458_p2 = scmp.lt.s32.totalorder %s3452_s15, %s3452_s15 }
 0x1df   :  { %v1831_v44 = vmax.f32 %v1791_v40, 0.0  ;;  %v1635_v43 = vadd.f32 %v2929_v30, %v4150_v58 }
 0x1e0   :  { %v2931_v45 = vpop.f32.mrf.mxu0  ;;  %p3459_p3 = por %p3458_p2, %p3457_p1 }
 0x1e1   :  { %v2932_v28 = vadd.f32 %v2931_v45, %v2930_v47  ;;  %3107 = vmatmul.mubr.f32.gmra.mxu1 %v1831_v44  ;;  %v1796_v37 = vadd.f32 %v3030_v13, %v1635_v43 }
 0x1e2   :  { %p3460_p4 = pnand %p3459_p3, %p3453_p0 }
 0x1e3   :  { %v1638_v48 = vadd.f32 %v2932_v28, %v4153_v8  ;;  %v1832_v49 = vmax.f32 %v1796_v37, 0.0 }
 0x1e5   :  { %v1799_v41 = vadd.f32 %v3031_v32, %v1638_v48  ;;  %3109 = vmatprep.mubr.f32.mxu1 %v1832_v49 }
 0x1e7   :  { %v1833_v51 = vmax.f32 %v1799_v41, 0.0 }
 0x1e9   :  { %3110 = vmatmul.mubr.f32.gmra.mxu1 %v1833_v51 }
 0x231   :  { %v3066_v55 = vpop.f32.mrf.mxu1 }
 0x232   :  { %v4193_v53 = vadd.f32 %v3066_v55, %v4190_v42 }
 0x233   :  { %v1923_v58 = vpop.f32.mrf.mxu1 }
 0x234   :  { %2084 = vmax.xlane.f32.xlu0 %v4193_v53  ;;  %v4197_v57 = vadd.f32 %v4190_v42, %v1923_v58 }
 0x238   :  { %2082 = vmax.xlane.f32.xlu0 %v4197_v57 }
 0x239   :  { %v3069_v8 = vpop.f32.mrf.mxu1 }
 0x23a   :  { %v4201_v36 = vadd.f32 %v3069_v8, %v4190_v42 }
 0x23b   :  { %v1933_v46 = vpop.f32.mrf.mxu1 }
 0x23c   :  { %2088 = vmax.xlane.f32.xlu1 %v4201_v36  ;;  %v4205_v54 = vadd.f32 %v4190_v42, %v1933_v46 }
 0x240   :  { %2086 = vmax.xlane.f32.xlu1 %v4205_v54 }
 0x241   :  { %v3072_v59 = vpop.f32.mrf.mxu1 }
 0x242   :  { %v4209_v3 = vadd.f32 %v3072_v59, %v4190_v42 }
 0x243   :  { %v1943_v50 = vpop.f32.mrf.mxu1 }
 0x244   :  { %v4212_v60 = vadd.f32 %v4190_v42, %v1943_v50  ;;  %2092 = vmax.xlane.f32.xlu1 %v4209_v3 }
 0x246   :  { %2090 = vmax.xlane.f32.xlu0 %v4212_v60 }
 0x249   :  { %v3075_v63 = vpop.f32.mrf.mxu1 }
 0x24a   :  { %v4217_v56 = vadd.f32 %v3075_v63, %v4190_v42 }
 0x24b   :  { %v1953_v1 = vpop.f32.mrf.mxu1 }
 0x24c   :  { %v4220_v15 = vadd.f32 %v4190_v42, %v1953_v1  ;;  %2096 = vmax.xlane.f32.xlu1 %v4217_v56 }
 0x24e   :  { %2094 = vmax.xlane.f32.xlu0 %v4220_v15 }
 0x251   :  { %v3078_v4 = vpop.f32.mrf.mxu1 }
 0x252   :  { %v4225_v5 = vadd.f32 %v3078_v4, %v4190_v42 }
 0x253   :  { %v1963_v62 = vpop.f32.mrf.mxu1 }
 0x254   :  { %v4228_v61 = vadd.f32 %v4190_v42, %v1963_v62  ;;  %2100 = vmax.xlane.f32.xlu1 %v4225_v5 }
 0x256   :  { %2098 = vmax.xlane.f32.xlu0 %v4228_v61 }
 0x259   :  { %v3081_v9 = vpop.f32.mrf.mxu1 }
 0x25a   :  { %v4233_v2 = vadd.f32 %v3081_v9, %v4190_v42 }
 0x25b   :  { %v1973_v27 = vpop.f32.mrf.mxu1 }
 0x25c   :  { %v4236_v10 = vadd.f32 %v4190_v42, %v1973_v27  ;;  %2104 = vmax.xlane.f32.xlu1 %v4233_v2 }
 0x25e   :  { %2102 = vmax.xlane.f32.xlu0 %v4236_v10 }
 0x261   :  { %v3084_v7 = vpop.f32.mrf.mxu1 }
 0x262   :  { %v4241_v11 = vadd.f32 %v3084_v7, %v4190_v42 }
 0x263   :  { %v1983_v16 = vpop.f32.mrf.mxu1 }
 0x264   :  { %v4244_v12 = vadd.f32 %v4190_v42, %v1983_v16  ;;  %2108 = vmax.xlane.f32.xlu1 %v4241_v11 }
 0x266   :  { %2106 = vmax.xlane.f32.xlu0 %v4244_v12 }
 0x269   :  { %v3087_v18 = vpop.f32.mrf.mxu1 }
 0x26a   :  { %v4249_v13 = vadd.f32 %v3087_v18, %v4190_v42 }
 0x26b   :  { %v1993_v39 = vpop.f32.mrf.mxu1 }
 0x26c   :  { %v4252_v6 = vadd.f32 %v4190_v42, %v1993_v39  ;;  %2112 = vmax.xlane.f32.xlu1 %v4249_v13 }
 0x26e   :  { %2110 = vmax.xlane.f32.xlu0 %v4252_v6 }
 0x271   :  { %v3090_v19 = vpop.f32.mrf.mxu1 }
 0x272   :  { %v4257_v21 = vadd.f32 %v3090_v19, %v4190_v42 }
 0x273   :  { %v2003_v24 = vpop.f32.mrf.mxu1 }
 0x274   :  { %v4260_v25 = vadd.f32 %v4190_v42, %v2003_v24  ;;  %2116 = vmax.xlane.f32.xlu1 %v4257_v21 }
 0x276   :  { %2114 = vmax.xlane.f32.xlu0 %v4260_v25 }
 0x279   :  { %v3093_v22 = vpop.f32.mrf.mxu1 }
 0x27a   :  { %v4265_v52 = vadd.f32 %v3093_v22, %v4190_v42 }
 0x27b   :  { %v2013_v17 = vpop.f32.mrf.mxu1 }
 0x27c   :  { %v4268_v23 = vadd.f32 %v4190_v42, %v2013_v17  ;;  %2120 = vmax.xlane.f32.xlu1 %v4265_v52 }
 0x27e   :  { %2118 = vmax.xlane.f32.xlu0 %v4268_v23 }
 0x281   :  { %v3096_v31 = vpop.f32.mrf.mxu1 }
 0x282   :  { %v4273_v29 = vadd.f32 %v3096_v31, %v4190_v42 }
 0x283   :  { %v2023_v0 = vpop.f32.mrf.mxu1 }
 0x284   :  { %v4276_v32 = vadd.f32 %v4190_v42, %v2023_v0  ;;  %2124 = vmax.xlane.f32.xlu1 %v4273_v29 }
 0x286   :  { %2122 = vmax.xlane.f32.xlu0 %v4276_v32 }
 0x289   :  { %v3099_v20 = vpop.f32.mrf.mxu1 }
 0x28a   :  { %v4281_v33 = vadd.f32 %v3099_v20, %v4190_v42 }
 0x28b   :  { %v2033_v34 = vpop.f32.mrf.mxu1 }
 0x28c   :  { %v4284_v35 = vadd.f32 %v4190_v42, %v2033_v34  ;;  %2128 = vmax.xlane.f32.xlu1 %v4281_v33 }
 0x28e   :  { %2126 = vmax.xlane.f32.xlu0 %v4284_v35 }
 0x291   :  { %v3102_v26 = vpop.f32.mrf.mxu1 }
 0x292   :  { %v4289_v14 = vadd.f32 %v3102_v26, %v4190_v42 }
 0x293   :  { %v2043_v38 = vpop.f32.mrf.mxu1 }
 0x294   :  { %v4292_v40 = vadd.f32 %v4190_v42, %v2043_v38  ;;  %2132 = vmax.xlane.f32.xlu1 %v4289_v14 }
 0x296   :  { %2130 = vmax.xlane.f32.xlu0 %v4292_v40 }
 0x299   :  { %v3105_v30 = vpop.f32.mrf.mxu1 }
 0x29a   :  { %v4297_v47 = vadd.f32 %v3105_v30, %v4190_v42 }
 0x29b   :  { %v2053_v44 = vpop.f32.mrf.mxu1 }
 0x29c   :  { %v4300_v43 = vadd.f32 %v4190_v42, %v2053_v44  ;;  %2136 = vmax.xlane.f32.xlu1 %v4297_v47 }
 0x29e   :  { %2134 = vmax.xlane.f32.xlu0 %v4300_v43 }
 0x2a1   :  { %v3108_v45 = vpop.f32.mrf.mxu1 }
 0x2a2   :  { %v4305_v28 = vadd.f32 %v3108_v45, %v4190_v42 }
 0x2a3   :  { %v2063_v37 = vpop.f32.mrf.mxu1 }
 0x2a4   :  { %v4308_v48 = vadd.f32 %v4190_v42, %v2063_v37  ;;  %2140 = vmax.xlane.f32.xlu1 %v4305_v28 }
 0x2a6   :  { %2138 = vmax.xlane.f32.xlu0 %v4308_v48 }
 0x2a9   :  { %v3111_v49 = vpop.f32.mrf.mxu1 }
 0x2aa   :  { %v4313_v41 = vadd.f32 %v3111_v49, %v4190_v42 }
 0x2ab   :  { %v2073_v51 = vpop.f32.mrf.mxu1 }
 0x2ac   :  { %v4316_v55 = vadd.f32 %v4190_v42, %v2073_v51  ;;  %2144 = vmax.xlane.f32.xlu1 %v4313_v41 }
 0x2ae   :  { %2142 = vmax.xlane.f32.xlu0 %v4316_v55 }
 0x2bd   :  { %v2085_v58 = vpop.xlane.xlu0 %2084 }
 0x2be   :  { %v2147_v8 = vsub.f32 %v4193_v53, %v2085_v58 }
 0x2c0   :  { %v2180_v46 = vmul.f32 1.442695, %v2147_v8 }
 0x2c1   :  { %v2083_v59 = vpop.xlane.xlu0 %2082 }
 0x2c2   :  { %3324 = vpow2.f32 %v2180_v46  ;;  %v2146_v50 = vsub.f32 %v4197_v57, %v2083_v59 }
 0x2c4   :  { %v2178_v63 = vmul.f32 1.442695, %v2146_v50 }
 0x2c5   :  { %v2089_v1 = vpop.xlane.xlu1 %2088 }
 0x2c6   :  { %3326 = vpow2.f32 %v2178_v63  ;;  %v2149_v4 = vsub.f32 %v4201_v36, %v2089_v1 }
 0x2c8   :  { %v2184_v62 = vmul.f32 1.442695, %v2149_v4 }
 0x2c9   :  { %v2087_v42 = vpop.xlane.xlu1 %2086 }
 0x2ca   :  { %3328 = vpow2.f32 %v2184_v62  ;;  %v2148_v9 = vsub.f32 %v4205_v54, %v2087_v42 }
 0x2cc   :  { %v2182_v27 = vmul.f32 1.442695, %v2148_v9 }
 0x2cd   :  { %v2093_v7 = vpop.xlane.xlu1 %2092 }
 0x2ce   :  { %3330 = vpow2.f32 %v2182_v27  ;;  %v2151_v53 = vsub.f32 %v4209_v3, %v2093_v7 }
 0x2cf   :  { %v4325_v16 = vpop.eup %3324  ;;  %v2091_v18 = vpop.xlane.xlu0 %2090 }
 0x2d0   :  { %v2188_v39 = vmul.f32 1.442695, %v2151_v53  ;;  %v2150_v57 = vsub.f32 %v4212_v60, %v2091_v18  ;;  %2244 = vadd.xlane.f32.xlu1 %v4325_v16 }
 0x2d2   :  { %3332 = vpow2.f32 %v2188_v39  ;;  %v2186_v36 = vmul.f32 1.442695, %v2150_v57 }
 0x2d3   :  { %v4329_v19 = vpop.eup %3326 }
 0x2d4   :  { %3334 = vpow2.f32 %v2186_v36  ;;  %2242 = vadd.xlane.f32.xlu0 %v4329_v19 }
 0x2d5   :  { %v2097_v54 = vpop.xlane.xlu1 %2096 }
 0x2d6   :  { %v2153_v24 = vsub.f32 %v4217_v56, %v2097_v54 }
 0x2d7   :  { %v4333_v22 = vpop.eup %3328  ;;  %v2095_v3 = vpop.xlane.xlu0 %2094 }
 0x2d8   :  { %v2192_v17 = vmul.f32 1.442695, %v2153_v24  ;;  %v2152_v31 = vsub.f32 %v4220_v15, %v2095_v3  ;;  %2248 = vadd.xlane.f32.xlu1 %v4333_v22 }
 0x2da   :  { %3336 = vpow2.f32 %v2192_v17  ;;  %v2190_v60 = vmul.f32 1.442695, %v2152_v31 }
 0x2db   :  { %v4337_v0 = vpop.eup %3330 }
 0x2dc   :  { %3338 = vpow2.f32 %v2190_v60  ;;  %2246 = vadd.xlane.f32.xlu0 %v4337_v0 }
 0x2dd   :  { %v2101_v20 = vpop.xlane.xlu1 %2100 }
 0x2de   :  { %v2155_v34 = vsub.f32 %v4225_v5, %v2101_v20 }
 0x2df   :  { %v4341_v26 = vpop.eup %3332  ;;  %v2099_v56 = vpop.xlane.xlu0 %2098 }
 0x2e0   :  { %v2196_v38 = vmul.f32 1.442695, %v2155_v34  ;;  %v2154_v30 = vsub.f32 %v4228_v61, %v2099_v56  ;;  %2252 = vadd.xlane.f32.xlu1 %v4341_v26 }
 0x2e1   :  { %v4345_v15 = vpop.eup %3334 }
 0x2e2   :  { %3340 = vpow2.f32 %v2196_v38  ;;  %v2194_v44 = vmul.f32 1.442695, %v2154_v30  ;;  %2250 = vadd.xlane.f32.xlu0 %v4345_v15 }
 0x2e4   :  { %3342 = vpow2.f32 %v2194_v44 }
 0x2e5   :  { %v2105_v45 = vpop.xlane.xlu1 %2104 }
 0x2e6   :  { %v2157_v37 = vsub.f32 %v4233_v2, %v2105_v45 }
 0x2e7   :  { %v4349_v49 = vpop.eup %3336  ;;  %v2103_v5 = vpop.xlane.xlu0 %2102 }
 0x2e8   :  { %v2200_v51 = vmul.f32 1.442695, %v2157_v37  ;;  %v2156_v58 = vsub.f32 %v4236_v10, %v2103_v5  ;;  %2256 = vadd.xlane.f32.xlu1 %v4349_v49 }
 0x2e9   :  { %v4353_v61 = vpop.eup %3338 }
 0x2ea   :  { %3344 = vpow2.f32 %v2200_v51  ;;  %v2198_v8 = vmul.f32 1.442695, %v2156_v58  ;;  %2254 = vadd.xlane.f32.xlu0 %v4353_v61 }
 0x2ec   :  { %3346 = vpow2.f32 %v2198_v8 }
 0x2ed   :  { %v2109_v46 = vpop.xlane.xlu1 %2108 }
 0x2ee   :  { %v2159_v59 = vsub.f32 %v4241_v11, %v2109_v46 }
 0x2ef   :  { %v4357_v50 = vpop.eup %3340  ;;  %v2107_v2 = vpop.xlane.xlu0 %2106 }
 0x2f0   :  { %v2204_v63 = vmul.f32 1.442695, %v2159_v59  ;;  %v2158_v1 = vsub.f32 %v4244_v12, %v2107_v2  ;;  %2260 = vadd.xlane.f32.xlu1 %v4357_v50 }
 0x2f1   :  { %v4361_v10 = vpop.eup %3342 }
 0x2f2   :  { %3348 = vpow2.f32 %v2204_v63  ;;  %v2202_v4 = vmul.f32 1.442695, %v2158_v1  ;;  %2258 = vadd.xlane.f32.xlu0 %v4361_v10 }
 0x2f4   :  { %3350 = vpow2.f32 %v2202_v4 }
 0x2f5   :  { %v2113_v62 = vpop.xlane.xlu1 %2112 }
 0x2f6   :  { %v2161_v42 = vsub.f32 %v4249_v13, %v2113_v62 }
 0x2f7   :  { %v4365_v9 = vpop.eup %3344  ;;  %v2111_v11 = vpop.xlane.xlu0 %2110 }
 0x2f8   :  { %v2208_v27 = vmul.f32 1.442695, %v2161_v42  ;;  %v2160_v7 = vsub.f32 %v4252_v6, %v2111_v11  ;;  %2264 = vadd.xlane.f32.xlu1 %v4365_v9 }
 0x2f9   :  { %v4369_v12 = vpop.eup %3346 }
 0x2fa   :  { %3352 = vpow2.f32 %v2208_v27  ;;  %v2206_v53 = vmul.f32 1.442695, %v2160_v7  ;;  %2262 = vadd.xlane.f32.xlu0 %v4369_v12 }
 0x2fc   :  { %3354 = vpow2.f32 %v2206_v53 }
 0x2fd   :  { %v2117_v18 = vpop.xlane.xlu1 %2116 }
 0x2fe   :  { %v2163_v39 = vsub.f32 %v4257_v21, %v2117_v18 }
 0x2ff   :  { %v4373_v57 = vpop.eup %3348  ;;  %v2115_v13 = vpop.xlane.xlu0 %2114 }
 0x300   :  { %v2212_v36 = vmul.f32 1.442695, %v2163_v39  ;;  %v2162_v54 = vsub.f32 %v4260_v25, %v2115_v13  ;;  %2268 = vadd.xlane.f32.xlu1 %v4373_v57 }
 0x301   :  { %v4377_v6 = vpop.eup %3350 }
 0x302   :  { %3356 = vpow2.f32 %v2212_v36  ;;  %v2210_v24 = vmul.f32 1.442695, %v2162_v54  ;;  %2266 = vadd.xlane.f32.xlu0 %v4377_v6 }
 0x304   :  { %3358 = vpow2.f32 %v2210_v24 }
 0x305   :  { %v2121_v3 = vpop.xlane.xlu1 %2120 }
 0x306   :  { %v2165_v17 = vsub.f32 %v4265_v52, %v2121_v3 }
 0x307   :  { %v4381_v31 = vpop.eup %3352  ;;  %v2119_v21 = vpop.xlane.xlu0 %2118 }
 0x308   :  { %v2216_v60 = vmul.f32 1.442695, %v2165_v17  ;;  %v2164_v20 = vsub.f32 %v4268_v23, %v2119_v21  ;;  %2272 = vadd.xlane.f32.xlu1 %v4381_v31 }
 0x309   :  { %v4385_v25 = vpop.eup %3354 }
 0x30a   :  { %3360 = vpow2.f32 %v2216_v60  ;;  %v2214_v34 = vmul.f32 1.442695, %v2164_v20  ;;  %2270 = vadd.xlane.f32.xlu0 %v4385_v25 }
 0x30c   :  { %3362 = vpow2.f32 %v2214_v34 }
 0x30d   :  { %v2125_v56 = vpop.xlane.xlu1 %2124 }
 0x30e   :  { %v2167_v38 = vsub.f32 %v4273_v29, %v2125_v56 }
 0x30f   :  { %v4389_v30 = vpop.eup %3356  ;;  %v2123_v52 = vpop.xlane.xlu0 %2122 }
 0x310   :  { %v2220_v44 = vmul.f32 1.442695, %v2167_v38  ;;  %v2166_v45 = vsub.f32 %v4276_v32, %v2123_v52  ;;  %2276 = vadd.xlane.f32.xlu1 %v4389_v30 }
 0x311   :  { %v4393_v23 = vpop.eup %3358 }
 0x312   :  { %3364 = vpow2.f32 %v2220_v44  ;;  %v2218_v37 = vmul.f32 1.442695, %v2166_v45  ;;  %2274 = vadd.xlane.f32.xlu0 %v4393_v23 }
 0x314   :  { %3366 = vpow2.f32 %v2218_v37 }
 0x315   :  { %v2129_v5 = vpop.xlane.xlu1 %2128 }
 0x316   :  { %v2169_v51 = vsub.f32 %v4281_v33, %v2129_v5 }
 0x317   :  { %v4397_v58 = vpop.eup %3360  ;;  %v2127_v29 = vpop.xlane.xlu0 %2126 }
 0x318   :  { %v2224_v8 = vmul.f32 1.442695, %v2169_v51  ;;  %v2168_v46 = vsub.f32 %v4284_v35, %v2127_v29  ;;  %2280 = vadd.xlane.f32.xlu1 %v4397_v58 }
 0x319   :  { %v4401_v32 = vpop.eup %3362 }
 0x31a   :  { %3368 = vpow2.f32 %v2224_v8  ;;  %v2222_v59 = vmul.f32 1.442695, %v2168_v46  ;;  %2278 = vadd.xlane.f32.xlu0 %v4401_v32 }
 0x31c   :  { %3370 = vpow2.f32 %v2222_v59 }
 0x31d   :  { %v2133_v2 = vpop.xlane.xlu1 %2132 }
 0x31e   :  { %v2171_v63 = vsub.f32 %v4289_v14, %v2133_v2 }
 0x31f   :  { %v4405_v1 = vpop.eup %3364  ;;  %v2131_v33 = vpop.xlane.xlu0 %2130 }
 0x320   :  { %v2228_v4 = vmul.f32 1.442695, %v2171_v63  ;;  %v2170_v62 = vsub.f32 %v4292_v40, %v2131_v33  ;;  %2284 = vadd.xlane.f32.xlu1 %v4405_v1 }
 0x321   :  { %v4409_v35 = vpop.eup %3366 }
 0x322   :  { %3372 = vpow2.f32 %v2228_v4  ;;  %v2226_v42 = vmul.f32 1.442695, %v2170_v62  ;;  %2282 = vadd.xlane.f32.xlu0 %v4409_v35 }
 0x324   :  { %3374 = vpow2.f32 %v2226_v42 }
 0x325   :  { %v2137_v11 = vpop.xlane.xlu1 %2136 }
 0x326   :  { %v2173_v27 = vsub.f32 %v4297_v47, %v2137_v11 }
 0x327   :  { %v4413_v7 = vpop.eup %3368  ;;  %v2135_v14 = vpop.xlane.xlu0 %2134 }
 0x328   :  { %v2232_v53 = vmul.f32 1.442695, %v2173_v27  ;;  %v2172_v18 = vsub.f32 %v4300_v43, %v2135_v14  ;;  %2288 = vadd.xlane.f32.xlu1 %v4413_v7 }
 0x329   :  { %v4417_v40 = vpop.eup %3370 }
 0x32a   :  { %3376 = vpow2.f32 %v2232_v53  ;;  %v2230_v39 = vmul.f32 1.442695, %v2172_v18  ;;  %2286 = vadd.xlane.f32.xlu0 %v4417_v40 }
 0x32c   :  { %3378 = vpow2.f32 %v2230_v39 }
 0x32d   :  { %v2141_v13 = vpop.xlane.xlu1 %2140 }
 0x32e   :  { %v2175_v36 = vsub.f32 %v4305_v28, %v2141_v13 }
 0x32f   :  { %v4421_v54 = vpop.eup %3372  ;;  %v2139_v47 = vpop.xlane.xlu0 %2138 }
 0x330   :  { %v2236_v24 = vmul.f32 1.442695, %v2175_v36  ;;  %v2174_v3 = vsub.f32 %v4308_v48, %v2139_v47  ;;  %2292 = vadd.xlane.f32.xlu1 %v4421_v54 }
 0x331   :  { %v4425_v43 = vpop.eup %3374 }
 0x332   :  { %3380 = vpow2.f32 %v2236_v24  ;;  %v2234_v17 = vmul.f32 1.442695, %v2174_v3  ;;  %2290 = vadd.xlane.f32.xlu0 %v4425_v43 }
 0x334   :  { %3382 = vpow2.f32 %v2234_v17 }
 0x335   :  { %v2145_v21 = vpop.xlane.xlu1 %2144 }
 0x336   :  { %v2177_v60 = vsub.f32 %v4313_v41, %v2145_v21 }
 0x337   :  { %v4429_v20 = vpop.eup %3376  ;;  %v2143_v28 = vpop.xlane.xlu0 %2142 }
 0x338   :  { %v2240_v34 = vmul.f32 1.442695, %v2177_v60  ;;  %v2176_v56 = vsub.f32 %v4316_v55, %v2143_v28  ;;  %2296 = vadd.xlane.f32.xlu1 %v4429_v20 }
 0x339   :  { %v4433_v48 = vpop.eup %3378 }
 0x33a   :  { %3384 = vpow2.f32 %v2240_v34  ;;  %v2238_v38 = vmul.f32 1.442695, %v2176_v56  ;;  %2294 = vadd.xlane.f32.xlu0 %v4433_v48 }
 0x33c   :  { %3386 = vpow2.f32 %v2238_v38 }
 0x33f   :  { %v4436_v52 = vpop.eup %3380 }
 0x340   :  { %2300 = vadd.xlane.f32.xlu1 %v4436_v52 }
 0x341   :  { %v4439_v41 = vpop.eup %3382 }
 0x342   :  { %2298 = vadd.xlane.f32.xlu0 %v4439_v41 }
 0x347   :  { %v4442_v44 = vpop.eup %3384 }
 0x348   :  { %2304 = vadd.xlane.f32.xlu1 %v4442_v44 }
 0x349   :  { %v4445_v55 = vpop.eup %3386 }
 0x34a   :  { %2302 = vadd.xlane.f32.xlu0 %v4445_v55 }
 0x359   :  { %v2245_v45 = vpop.xlane.xlu1 %2244 }
 0x35a   :  { %3388 = vrcp.f32 %v2245_v45 }
 0x35d   :  { %v2243_v37 = vpop.xlane.xlu0 %2242 }
 0x35e   :  { %3390 = vrcp.f32 %v2243_v37 }
 0x361   :  { %v2249_v5 = vpop.xlane.xlu1 %2248 }
 0x362   :  { %3392 = vrcp.f32 %v2249_v5 }
 0x365   :  { %v2247_v51 = vpop.xlane.xlu0 %2246 }
 0x366   :  { %3394 = vrcp.f32 %v2247_v51 }
 0x367   :  { %v3389_v29 = vpop.eup %3388 }
 0x368   :  { %v2339_v8 = vmul.f32 %v3389_v29, %v4325_v16 }
 0x369   :  { %v2253_v46 = vpop.xlane.xlu1 %2252 }
 0x36a   :  { %2371 = vst [vmem:[#allocation2 + $0x8] sm:$0xff] %v2339_v8  ;;  %3396 = vrcp.f32 %v2253_v46 }
 0x36b   :  { %v3391_v59 = vpop.eup %3390  ;;  %v2251_v2 = vpop.xlane.xlu0 %2250 }
 0x36c   :  { %v2338_v63 = vmul.f32 %v3391_v59, %v4329_v19  ;;  %3398 = vrcp.f32 %v2251_v2 }
 0x36e   :  { %2370 = vst [vmem:[#allocation2] sm:$0xff] %v2338_v63 }
 0x36f   :  { %v3393_v33 = vpop.eup %3392 }
 0x370   :  { %v2341_v4 = vmul.f32 %v3393_v33, %v4333_v22 }
 0x371   :  { %v2257_v62 = vpop.xlane.xlu1 %2256 }
 0x372   :  { %2373 = vst [vmem:[#allocation2 + $0x18] sm:$0xff] %v2341_v4  ;;  %3400 = vrcp.f32 %v2257_v62 }
 0x373   :  { %v3395_v42 = vpop.eup %3394  ;;  %v2255_v11 = vpop.xlane.xlu0 %2254 }
 0x374   :  { %v2340_v27 = vmul.f32 %v3395_v42, %v4337_v0  ;;  %3402 = vrcp.f32 %v2255_v11 }
 0x376   :  { %2372 = vst [vmem:[#allocation2 + $0x10] sm:$0xff] %v2340_v27 }
 0x377   :  { %v3397_v16 = vpop.eup %3396 }
 0x378   :  { %v2343_v14 = vmul.f32 %v3397_v16, %v4341_v26 }
 0x379   :  { %v3399_v53 = vpop.eup %3398  ;;  %v2261_v18 = vpop.xlane.xlu1 %2260 }
 0x37a   :  { %2375 = vst [vmem:[#allocation2 + $0x28] sm:$0xff] %v2343_v14  ;;  %v2342_v19 = vmul.f32 %v3399_v53, %v4345_v15  ;;  %3404 = vrcp.f32 %v2261_v18 }
 0x37b   :  { %v2259_v39 = vpop.xlane.xlu0 %2258 }
 0x37c   :  { %2374 = vst [vmem:[#allocation2 + $0x20] sm:$0xff] %v2342_v19  ;;  %3406 = vrcp.f32 %v2259_v39 }
 0x37f   :  { %v3401_v22 = vpop.eup %3400 }
 0x380   :  { %v2345_v13 = vmul.f32 %v3401_v22, %v4349_v49 }
 0x381   :  { %v3403_v36 = vpop.eup %3402  ;;  %v2265_v47 = vpop.xlane.xlu1 %2264 }
 0x382   :  { %2377 = vst [vmem:[#allocation2 + $0x38] sm:$0xff] %v2345_v13  ;;  %v2344_v0 = vmul.f32 %v3403_v36, %v4353_v61  ;;  %3408 = vrcp.f32 %v2265_v47 }
 0x383   :  { %v2263_v24 = vpop.xlane.xlu0 %2262 }
 0x384   :  { %2376 = vst [vmem:[#allocation2 + $0x30] sm:$0xff] %v2344_v0  ;;  %3410 = vrcp.f32 %v2263_v24 }
 0x387   :  { %v3405_v26 = vpop.eup %3404 }
 0x388   :  { %v2347_v3 = vmul.f32 %v3405_v26, %v4357_v50 }
 0x389   :  { %v3407_v15 = vpop.eup %3406  ;;  %v2269_v17 = vpop.xlane.xlu1 %2268 }
 0x38a   :  { %2379 = vst [vmem:[#allocation2 + $0x48] sm:$0xff] %v2347_v3  ;;  %v2346_v21 = vmul.f32 %v3407_v15, %v4361_v10  ;;  %3412 = vrcp.f32 %v2269_v17 }
 0x38b   :  { %v2267_v60 = vpop.xlane.xlu0 %2266 }
 0x38c   :  { %2378 = vst [vmem:[#allocation2 + $0x40] sm:$0xff] %v2346_v21  ;;  %3414 = vrcp.f32 %v2267_v60 }
 0x38f   :  { %v3409_v49 = vpop.eup %3408 }
 0x390   :  { %v2349_v28 = vmul.f32 %v3409_v49, %v4365_v9 }
 0x391   :  { %v3411_v61 = vpop.eup %3410  ;;  %v2273_v34 = vpop.xlane.xlu1 %2272 }
 0x392   :  { %2381 = vst [vmem:[#allocation2 + $0x58] sm:$0xff] %v2349_v28  ;;  %v2348_v56 = vmul.f32 %v3411_v61, %v4369_v12  ;;  %3416 = vrcp.f32 %v2273_v34 }
 0x393   :  { %v2271_v38 = vpop.xlane.xlu0 %2270 }
 0x394   :  { %2380 = vst [vmem:[#allocation2 + $0x50] sm:$0xff] %v2348_v56  ;;  %3418 = vrcp.f32 %v2271_v38 }
 0x397   :  { %v3413_v50 = vpop.eup %3412 }
 0x398   :  { %v2351_v45 = vmul.f32 %v3413_v50, %v4373_v57 }
 0x399   :  { %v3415_v10 = vpop.eup %3414  ;;  %v2277_v37 = vpop.xlane.xlu1 %2276 }
 0x39a   :  { %2383 = vst [vmem:[#allocation2 + $0x68] sm:$0xff] %v2351_v45  ;;  %v2350_v5 = vmul.f32 %v3415_v10, %v4377_v6  ;;  %3420 = vrcp.f32 %v2277_v37 }
 0x39b   :  { %v2275_v51 = vpop.xlane.xlu0 %2274 }
 0x39c   :  { %2382 = vst [vmem:[#allocation2 + $0x60] sm:$0xff] %v2350_v5  ;;  %3422 = vrcp.f32 %v2275_v51 }
 0x39f   :  { %v3417_v9 = vpop.eup %3416 }
 0x3a0   :  { %v2353_v29 = vmul.f32 %v3417_v9, %v4381_v31 }
 0x3a1   :  { %v3419_v12 = vpop.eup %3418  ;;  %v2281_v8 = vpop.xlane.xlu1 %2280 }
 0x3a2   :  { %2385 = vst [vmem:[#allocation2 + $0x78] sm:$0xff] %v2353_v29  ;;  %v2352_v46 = vmul.f32 %v3419_v12, %v4385_v25  ;;  %3424 = vrcp.f32 %v2281_v8 }
 0x3a3   :  { %v2279_v59 = vpop.xlane.xlu0 %2278 }
 0x3a4   :  { %2384 = vst [vmem:[#allocation2 + $0x70] sm:$0xff] %v2352_v46  ;;  %3426 = vrcp.f32 %v2279_v59 }
 0x3a7   :  { %v3421_v57 = vpop.eup %3420 }
 0x3a8   :  { %v2355_v2 = vmul.f32 %v3421_v57, %v4389_v30 }
 0x3a9   :  { %v3423_v6 = vpop.eup %3422  ;;  %v2285_v63 = vpop.xlane.xlu1 %2284 }
 0x3aa   :  { %2387 = vst [vmem:[#allocation2 + $0x88] sm:$0xff] %v2355_v2  ;;  %v2354_v33 = vmul.f32 %v3423_v6, %v4393_v23  ;;  %3428 = vrcp.f32 %v2285_v63 }
 0x3ab   :  { %v2283_v4 = vpop.xlane.xlu0 %2282 }
 0x3ac   :  { %2386 = vst [vmem:[#allocation2 + $0x80] sm:$0xff] %v2354_v33  ;;  %3430 = vrcp.f32 %v2283_v4 }
 0x3af   :  { %v3425_v31 = vpop.eup %3424 }
 0x3b0   :  { %v2357_v62 = vmul.f32 %v3425_v31, %v4397_v58 }
 0x3b1   :  { %v3427_v25 = vpop.eup %3426  ;;  %v2289_v42 = vpop.xlane.xlu1 %2288 }
 0x3b2   :  { %2389 = vst [vmem:[#allocation2 + $0x98] sm:$0xff] %v2357_v62  ;;  %v2356_v11 = vmul.f32 %v3427_v25, %v4401_v32  ;;  %3432 = vrcp.f32 %v2289_v42 }
 0x3b3   :  { %v2287_v27 = vpop.xlane.xlu0 %2286 }
 0x3b4   :  { %2388 = vst [vmem:[#allocation2 + $0x90] sm:$0xff] %v2356_v11  ;;  %3434 = vrcp.f32 %v2287_v27 }
 0x3b7   :  { %v3429_v30 = vpop.eup %3428 }
 0x3b8   :  { %v2359_v16 = vmul.f32 %v3429_v30, %v4405_v1 }
 0x3b9   :  { %v3431_v23 = vpop.eup %3430  ;;  %v2293_v14 = vpop.xlane.xlu1 %2292 }
 0x3ba   :  { %2391 = vst [vmem:[#allocation2 + $0xa8] sm:$0xff] %v2359_v16  ;;  %v2358_v53 = vmul.f32 %v3431_v23, %v4409_v35  ;;  %3436 = vrcp.f32 %v2293_v14 }
 0x3bb   :  { %v2291_v18 = vpop.xlane.xlu0 %2290 }
 0x3bc   :  { %2390 = vst [vmem:[#allocation2 + $0xa0] sm:$0xff] %v2358_v53  ;;  %3438 = vrcp.f32 %v2291_v18 }
 0x3bf   :  { %v3433_v58 = vpop.eup %3432 }
 0x3c0   :  { %v2361_v19 = vmul.f32 %v3433_v58, %v4413_v7 }
 0x3c1   :  { %v3435_v32 = vpop.eup %3434  ;;  %v2297_v39 = vpop.xlane.xlu1 %2296 }
 0x3c2   :  { %2393 = vst [vmem:[#allocation2 + $0xb8] sm:$0xff] %v2361_v19  ;;  %v2360_v22 = vmul.f32 %v3435_v32, %v4417_v40  ;;  %3440 = vrcp.f32 %v2297_v39 }
 0x3c3   :  { %v2295_v13 = vpop.xlane.xlu0 %2294 }
 0x3c4   :  { %2392 = vst [vmem:[#allocation2 + $0xb0] sm:$0xff] %v2360_v22  ;;  %3442 = vrcp.f32 %v2295_v13 }
 0x3c7   :  { %v3437_v1 = vpop.eup %3436 }
 0x3c8   :  { %v2363_v36 = vmul.f32 %v3437_v1, %v4421_v54 }
 0x3c9   :  { %v3439_v35 = vpop.eup %3438  ;;  %v2301_v47 = vpop.xlane.xlu1 %2300 }
 0x3ca   :  { %2395 = vst [vmem:[#allocation2 + $0xc8] sm:$0xff] %v2363_v36  ;;  %v2362_v0 = vmul.f32 %v3439_v35, %v4425_v43  ;;  %3444 = vrcp.f32 %v2301_v47 }
 0x3cb   :  { %v2299_v24 = vpop.xlane.xlu0 %2298 }
 0x3cc   :  { %2394 = vst [vmem:[#allocation2 + $0xc0] sm:$0xff] %v2362_v0  ;;  %3446 = vrcp.f32 %v2299_v24 }
 0x3cf   :  { %v3441_v7 = vpop.eup %3440 }
 0x3d0   :  { %v2365_v26 = vmul.f32 %v3441_v7, %v4429_v20 }
 0x3d1   :  { %v3443_v40 = vpop.eup %3442  ;;  %v2305_v3 = vpop.xlane.xlu1 %2304 }
 0x3d2   :  { %2397 = vst [vmem:[#allocation2 + $0xd8] sm:$0xff] %v2365_v26  ;;  %v2364_v15 = vmul.f32 %v3443_v40, %v4433_v48  ;;  %3448 = vrcp.f32 %v2305_v3 }
 0x3d3   :  { %v2303_v17 = vpop.xlane.xlu0 %2302 }
 0x3d4   :  { %2396 = vst [vmem:[#allocation2 + $0xd0] sm:$0xff] %v2364_v15  ;;  %3450 = vrcp.f32 %v2303_v17 }
 0x3d7   :  { %v3445_v54 = vpop.eup %3444 }
 0x3d8   :  { %v2367_v21 = vmul.f32 %v3445_v54, %v4436_v52 }
 0x3d9   :  { %v3447_v43 = vpop.eup %3446 }
 0x3da   :  { %2399 = vst [vmem:[#allocation2 + $0xe8] sm:$0xff] %v2367_v21  ;;  %v2366_v60 = vmul.f32 %v3447_v43, %v4439_v41 }
 0x3dc   :  { %2398 = vst [vmem:[#allocation2 + $0xe0] sm:$0xff] %v2366_v60 }
 0x3df   :  { %v3449_v49 = vpop.eup %3448 }
 0x3e0   :  { %v2369_v20 = vmul.f32 %v3449_v49, %v4442_v44 }
 0x3e1   :  { %v3451_v28 = vpop.eup %3450 }
 0x3e2   :  { %2401 = vst [vmem:[#allocation2 + $0xf8] sm:$0xff] %v2369_v20  ;;  %v2368_v48 = vmul.f32 %v3451_v28, %v4445_v55 }
 0x3e4   :  { %2400 = vst [vmem:[#allocation2 + $0xf0] sm:$0xff] %v2368_v48 }
 0x3e5   :  { %3463 = shalt.err (!%p3460_p4)
}
 0x3e6   :  { %s3475_s16 = smov 128   ;;  %s3476_s17 = smov 8  }
 0x3e7   :  { %2413 = dma.vmem_to_hbm [thread:$0]  %s2408_s14, 4096, %s4488_s5, [#allocation3], %s3475_s16, %s3475_s16, %s3476_s17  }
 0x3e8   :  { %3472 = dma.done.wait [#allocation3], 4096  }
 0x3e9   :  { %3473 = vsyncadd [#allocation3], 4294963200 }
 0x3ea   :  { %2417 = vsyncpa [#allocation3], 1 }

</bundles_post_ra>
